<compile_context>
chip_gen: v6e
topology: v6e:2x2x1
jax: 0.10.0
libtpu: 0.0.40
codegen_flags: <defaults>
</compile_context>

<pallas_src>
import math
from functools import partial

import jax
import jax.numpy as jnp
from jax.experimental import pallas as pl

# ----------------------------- config -----------------------------
VOCAB = 32
HIDDEN = 128
N_LAYERS = 2
N_HEADS = 4
HEAD_DIM = HIDDEN // N_HEADS
INTERMEDIATE = 256
MAX_POS = 16
BATCH = 2
SEQ = 8
LN_EPS = 1e-12          # BERT default
NUM_CLASSES = 2
LOGIT_PAD = 128         # pad classifier output to a lane-dense width


# ----------------------------- fused kernel -----------------------------
def _bert_fused_kernel(
    seq, n_batch,
    emb_ref, bias_ref,
    qkv_w_ref, qkv_b_ref, wo_ref, bo_ref,
    ln1_g_ref, ln1_b_ref, w1_ref, b1_ref, w2_ref, b2_ref,
    ln2_g_ref, ln2_b_ref,
    emb_ln_g_ref, emb_ln_b_ref, fc_w_ref, fc_b_ref,
    out_ref,
):
    """Whole encoder + classifier for all B*S tokens; activations never leave VMEM."""
    tokens = n_batch * seq
    scale = 1.0 / math.sqrt(HEAD_DIM)

    def layernorm(x, g, b):
        mu = jnp.mean(x, axis=-1, keepdims=True)
        xc = x - mu
        var = jnp.mean(xc * xc, axis=-1, keepdims=True)
        return xc * jax.lax.rsqrt(var + LN_EPS) * g + b

    def mm(x, w):
        # bf16 MXU matmul with f32 accumulation.
        return jnp.dot(x.astype(jnp.bfloat16), w.astype(jnp.bfloat16),
                       preferred_element_type=jnp.float32)

    def gelu(y):
        # tanh-approx GELU (EUP tanh); exact-erf GELU of HF BERT differs by <1e-3.
        c = math.sqrt(2.0 / math.pi)
        return 0.5 * y * (1.0 + jnp.tanh(c * (y + 0.044715 * y * y * y)))

    # --- embedding LayerNorm ---
    h = layernorm(emb_ref[...], emb_ln_g_ref[...], emb_ln_b_ref[...])      # (B*S, H) f32
    bias = bias_ref[...]                                                    # (B*S, B*S) additive mask

    # --- transformer layers (static unroll; all weights resident in VMEM) ---
    for l in range(N_LAYERS):
        # fused QKV projection: one (B*S,H) x (H,3H) MXU pass
        qkv = mm(h, qkv_w_ref[l]) + qkv_b_ref[l]                            # (B*S, 3H) f32
        q = qkv[:, 0:HIDDEN]
        k = qkv[:, HIDDEN:2 * HIDDEN]
        v = qkv[:, 2 * HIDDEN:3 * HIDDEN]
        wo_l = wo_ref[l]                                                    # (H, H) bf16

        # per-head attention; context folded directly into the output projection
        attn = jnp.zeros((tokens, HIDDEN), jnp.float32)
        for hd in range(N_HEADS):
            lo = hd * HEAD_DIM
            qh = q[:, lo:lo + HEAD_DIM]                                     # (T, D)
            kh = k[:, lo:lo + HEAD_DIM]
            vh = v[:, lo:lo + HEAD_DIM]
            s = jax.lax.dot_general(                                        # q . k^T, no transpose
                qh.astype(jnp.bfloat16), kh.astype(jnp.bfloat16),
                (((1,), (1,)), ((), ())),
                preferred_element_type=jnp.float32) * scale + bias          # (T, T)
            m = jnp.max(s, axis=-1, keepdims=True)
            p = jnp.exp(s - m)
            p = p * pl.reciprocal(jnp.sum(p, axis=-1, keepdims=True), approx=True)
            ctx = mm(p, vh)                                                 # (T, D)
            attn = attn + mm(ctx, wo_l[lo:lo + HEAD_DIM, :])                # (T, H) accumulate

        attn = attn + bo_ref[l]
        h = layernorm(attn + h, ln1_g_ref[l], ln1_b_ref[l])

        # feed-forward
        inter = gelu(mm(h, w1_ref[l]) + b1_ref[l])                          # (T, I)
        ffn = mm(inter, w2_ref[l]) + b2_ref[l]                              # (T, H)
        h = layernorm(ffn + h, ln2_g_ref[l], ln2_b_ref[l])

    # --- classifier head on [CLS] (token 0 of every sequence); lane-padded to 128 ---
    # TODO(synk): nn.Dropout(0.1) is identity in eval mode; no stochastic dropout applied.
    cls = jnp.concatenate([h[bi * seq:bi * seq + 1, :] for bi in range(n_batch)], axis=0)  # (B, H)
    logits = mm(cls, fc_w_ref[...]) + fc_b_ref[...]                         # (B, 128)
    out_ref[...] = logits


# ----------------------------- parameters -----------------------------
def init_params(key):
    def nrm(k, shape, dtype=jnp.float32):
        return (0.02 * jax.random.normal(k, shape, jnp.float32)).astype(dtype)

    bf = jnp.bfloat16
    k = jax.random.split(key, 10)
    fc_full = jnp.zeros((HIDDEN, LOGIT_PAD), jnp.float32)
    fc_full = fc_full.at[:, :NUM_CLASSES].set(
        0.02 * jax.random.normal(k[7], (HIDDEN, NUM_CLASSES), jnp.float32))
    return {
        # embeddings (f32; gather stays in XLA)
        "word_emb": nrm(k[0], (VOCAB, HIDDEN)),
        "pos_emb": nrm(k[1], (MAX_POS, HIDDEN)),
        "type_emb": nrm(k[2], (2, HIDDEN)),
        "emb_ln_g": jnp.ones((1, HIDDEN), jnp.float32),
        "emb_ln_b": jnp.zeros((1, HIDDEN), jnp.float32),
        # stacked per-layer weights; matmul weights in bf16, LN/bias in f32
        "qkv_w": nrm(k[3], (N_LAYERS, HIDDEN, 3 * HIDDEN), bf),
        "qkv_b": jnp.zeros((N_LAYERS, 1, 3 * HIDDEN), jnp.float32),
        "wo": nrm(k[4], (N_LAYERS, HIDDEN, HIDDEN), bf),
        "bo": jnp.zeros((N_LAYERS, 1, HIDDEN), jnp.float32),
        "ln1_g": jnp.ones((N_LAYERS, 1, HIDDEN), jnp.float32),
        "ln1_b": jnp.zeros((N_LAYERS, 1, HIDDEN), jnp.float32),
        "w1": nrm(k[5], (N_LAYERS, HIDDEN, INTERMEDIATE), bf),
        "b1": jnp.zeros((N_LAYERS, 1, INTERMEDIATE), jnp.float32),
        "w2": nrm(k[6], (N_LAYERS, INTERMEDIATE, HIDDEN), bf),
        "b2": jnp.zeros((N_LAYERS, 1, HIDDEN), jnp.float32),
        "ln2_g": jnp.ones((N_LAYERS, 1, HIDDEN), jnp.float32),
        "ln2_b": jnp.zeros((N_LAYERS, 1, HIDDEN), jnp.float32),
        # classifier head, zero-padded to 128 output lanes
        "fc_w": fc_full.astype(bf),
        "fc_b": jnp.zeros((1, LOGIT_PAD), jnp.float32),
    }


# ----------------------------- forward -----------------------------
def bert_classifier_forward(params, x):
    """x: (B, S) int32 token ids. Returns (logits (B, 2), None)."""
    b, s = x.shape
    pad_id = 0

    # fused additive attention bias: key-padding mask + block-diagonal batch mask (B*S, B*S)
    key_mask = (x != pad_id).astype(jnp.float32)                            # (B, S)
    key_bias = (1.0 - key_mask) * (-1e9)                                    # (B, S)
    batch_of = jnp.repeat(jnp.arange(b), s)                                 # (B*S,)
    same_batch = batch_of[:, None] == batch_of[None, :]                     # (B*S, B*S)
    bias = jnp.where(same_batch, key_bias.reshape(1, -1), jnp.float32(-1e9))

    # embedding gather + sums stay in plain JAX (glue); the fused kernel does everything else.
    we = jnp.take(params["word_emb"], x, axis=0)                            # (B, S, H)
    emb = we + params["pos_emb"][None, :s, :] + params["type_emb"][0][None, None, :]
    emb = emb.reshape(b * s, HIDDEN)                                        # (B*S, H)

    args = [
        emb, bias,
        params["qkv_w"], params["qkv_b"], params["wo"], params["bo"],
        params["ln1_g"], params["ln1_b"], params["w1"], params["b1"],
        params["w2"], params["b2"], params["ln2_g"], params["ln2_b"],
        params["emb_ln_g"], params["emb_ln_b"], params["fc_w"], params["fc_b"],
    ]

    # Single grid-less invocation: all inputs (< ~1 MiB) resident in VMEM, one launch.
    out = pl.pallas_call(
        partial(_bert_fused_kernel, s, b),
        out_shape=jax.ShapeDtypeStruct((b, LOGIT_PAD), jnp.float32),
    )(*args)

    logits = out[:, :NUM_CLASSES]                                           # (B, 2)
    return logits, None


# ----------------------------- main -----------------------------
if __name__ == "__main__":
    key = jax.random.PRNGKey(0)
    pkey, dkey = jax.random.split(key)
    params = init_params(pkey)

    # deterministic token ids in [1, VOCAB); pad the tail of the second sequence
    # to exercise the attention mask (pad_id == 0).
    ids = jax.random.randint(dkey, (BATCH, SEQ), 1, VOCAB, dtype=jnp.int32)
    ids = ids.at[1, SEQ - 2:].set(0)

    fwd = jax.jit(bert_classifier_forward)
    logits, aux = fwd(params, ids)
    jax.block_until_ready(logits)
    assert logits.shape == (BATCH, NUM_CLASSES) and aux is None
    assert bool(jnp.all(jnp.isfinite(logits)))
    print("KERNEL_OK")
</pallas_src>

<mosaic_0001>
module attributes {stable_mosaic.version = 11 : i64} {
  func.func @_bert_fused_kernel(%arg0: memref<16x128xf32, #tpu.memory_space<vmem>>, %arg1: memref<16x16xf32, #tpu.memory_space<vmem>>, %arg2: memref<2x128x384xbf16, #tpu.memory_space<vmem>>, %arg3: memref<2x1x384xf32, #tpu.memory_space<vmem>>, %arg4: memref<2x128x128xbf16, #tpu.memory_space<vmem>>, %arg5: memref<2x1x128xf32, #tpu.memory_space<vmem>>, %arg6: memref<2x1x128xf32, #tpu.memory_space<vmem>>, %arg7: memref<2x1x128xf32, #tpu.memory_space<vmem>>, %arg8: memref<2x128x256xbf16, #tpu.memory_space<vmem>>, %arg9: memref<2x1x256xf32, #tpu.memory_space<vmem>>, %arg10: memref<2x256x128xbf16, #tpu.memory_space<vmem>>, %arg11: memref<2x1x128xf32, #tpu.memory_space<vmem>>, %arg12: memref<2x1x128xf32, #tpu.memory_space<vmem>>, %arg13: memref<2x1x128xf32, #tpu.memory_space<vmem>>, %arg14: memref<1x128xf32, #tpu.memory_space<vmem>>, %arg15: memref<1x128xf32, #tpu.memory_space<vmem>>, %arg16: memref<128x128xbf16, #tpu.memory_space<vmem>>, %arg17: memref<1x128xf32, #tpu.memory_space<vmem>>, %arg18: memref<2x128xf32, #tpu.memory_space<vmem>>) attributes {dimension_semantics = [], scalar_prefetch = 0 : i64, scratch_operands = 0 : i64, tpu.core_type = #tpu.core_type<tc>} {
    %c0 = arith.constant 0 : index
    %c0_0 = arith.constant 0 : index
    %0 = vector.load %arg0[%c0, %c0_0] : memref<16x128xf32, #tpu.memory_space<vmem>>, vector<16x128xf32>
    %c0_1 = arith.constant 0 : index
    %c0_2 = arith.constant 0 : index
    %1 = vector.load %arg14[%c0_1, %c0_2] : memref<1x128xf32, #tpu.memory_space<vmem>>, vector<1x128xf32>
    %c0_3 = arith.constant 0 : index
    %c0_4 = arith.constant 0 : index
    %2 = vector.load %arg15[%c0_3, %c0_4] : memref<1x128xf32, #tpu.memory_space<vmem>>, vector<1x128xf32>
    %cst = arith.constant dense<0.000000e+00> : vector<16xf32>
    %3 = vector.multi_reduction <add>, %0, %cst [1] : vector<16x128xf32> to vector<16xf32>
    %4 = vector.shape_cast %3 : vector<16xf32> to vector<16x1xf32>
    %cst_5 = arith.constant 1.280000e+02 : f32
    %5 = vector.broadcast %cst_5 : f32 to vector<16x1xf32>
    %6 = arith.divf %4, %5 : vector<16x1xf32>
    %7 = vector.broadcast %6 : vector<16x1xf32> to vector<16x128xf32>
    %8 = arith.subf %0, %7 : vector<16x128xf32>
    %9 = arith.mulf %8, %8 : vector<16x128xf32>
    %cst_6 = arith.constant dense<0.000000e+00> : vector<16xf32>
    %10 = vector.multi_reduction <add>, %9, %cst_6 [1] : vector<16x128xf32> to vector<16xf32>
    %11 = vector.shape_cast %10 : vector<16xf32> to vector<16x1xf32>
    %cst_7 = arith.constant 1.280000e+02 : f32
    %12 = vector.broadcast %cst_7 : f32 to vector<16x1xf32>
    %13 = arith.divf %11, %12 : vector<16x1xf32>
    %cst_8 = arith.constant 9.99999996E-13 : f32
    %14 = vector.broadcast %cst_8 : f32 to vector<16x1xf32>
    %15 = arith.addf %13, %14 : vector<16x1xf32>
    %16 = math.rsqrt %15 : vector<16x1xf32>
    %17 = vector.broadcast %16 : vector<16x1xf32> to vector<16x128xf32>
    %18 = arith.mulf %8, %17 : vector<16x128xf32>
    %19 = vector.broadcast %1 : vector<1x128xf32> to vector<16x128xf32>
    %20 = arith.mulf %18, %19 : vector<16x128xf32>
    %21 = vector.broadcast %2 : vector<1x128xf32> to vector<16x128xf32>
    %22 = arith.addf %20, %21 : vector<16x128xf32>
    %c0_9 = arith.constant 0 : index
    %c0_10 = arith.constant 0 : index
    %23 = vector.load %arg1[%c0_9, %c0_10] : memref<16x16xf32, #tpu.memory_space<vmem>>, vector<16x16xf32>
    %c0_11 = arith.constant 0 : index
    %c0_12 = arith.constant 0 : index
    %c0_13 = arith.constant 0 : index
    %24 = vector.load %arg2[%c0_11, %c0_12, %c0_13] : memref<2x128x384xbf16, #tpu.memory_space<vmem>>, vector<1x128x384xbf16>
    %25 = vector.shape_cast %24 : vector<1x128x384xbf16> to vector<128x384xbf16>
    %26 = arith.truncf %22 : vector<16x128xf32> to vector<16x128xbf16>
    %cst_14 = arith.constant dense<0.000000e+00> : vector<16x384xf32>
    %27 = tpu.matmul %26, %25, %cst_14 {dimension_numbers = #tpu.dot_dimension_numbers<[1], [0], [0], [1], [0, 0, 1, 1], [], []>} : vector<16x128xbf16>, vector<128x384xbf16>, vector<16x384xf32> -> vector<16x384xf32>
    %c0_15 = arith.constant 0 : index
    %c0_16 = arith.constant 0 : index
    %c0_17 = arith.constant 0 : index
    %28 = vector.load %arg3[%c0_15, %c0_16, %c0_17] : memref<2x1x384xf32, #tpu.memory_space<vmem>>, vector<1x1x384xf32>
    %29 = vector.shape_cast %28 : vector<1x1x384xf32> to vector<1x384xf32>
    %30 = vector.broadcast %29 : vector<1x384xf32> to vector<16x384xf32>
    %31 = arith.addf %27, %30 : vector<16x384xf32>
    %32 = vector.extract_strided_slice %31 {offsets = [0, 0], sizes = [16, 128], strides = [1, 1]} : vector<16x384xf32> to vector<16x128xf32>
    %33 = vector.extract_strided_slice %31 {offsets = [0, 128], sizes = [16, 128], strides = [1, 1]} : vector<16x384xf32> to vector<16x128xf32>
    %34 = vector.extract_strided_slice %31 {offsets = [0, 256], sizes = [16, 128], strides = [1, 1]} : vector<16x384xf32> to vector<16x128xf32>
    %c0_18 = arith.constant 0 : index
    %c0_19 = arith.constant 0 : index
    %c0_20 = arith.constant 0 : index
    %35 = vector.load %arg4[%c0_18, %c0_19, %c0_20] : memref<2x128x128xbf16, #tpu.memory_space<vmem>>, vector<1x128x128xbf16>
    %36 = vector.shape_cast %35 : vector<1x128x128xbf16> to vector<128x128xbf16>
    %cst_21 = arith.constant 0.000000e+00 : f32
    %37 = vector.broadcast %cst_21 : f32 to vector<16x128xf32>
    %38 = vector.extract_strided_slice %32 {offsets = [0, 0], sizes = [16, 32], strides = [1, 1]} : vector<16x128xf32> to vector<16x32xf32>
    %39 = vector.extract_strided_slice %33 {offsets = [0, 0], sizes = [16, 32], strides = [1, 1]} : vector<16x128xf32> to vector<16x32xf32>
    %40 = vector.extract_strided_slice %34 {offsets = [0, 0], sizes = [16, 32], strides = [1, 1]} : vector<16x128xf32> to vector<16x32xf32>
    %41 = arith.truncf %38 : vector<16x32xf32> to vector<16x32xbf16>
    %42 = arith.truncf %39 : vector<16x32xf32> to vector<16x32xbf16>
    %cst_22 = arith.constant dense<0.000000e+00> : vector<16x16xf32>
    %43 = tpu.matmul %41, %42, %cst_22 {dimension_numbers = #tpu.dot_dimension_numbers<[1], [1], [0], [0], [0, 0, 1, 0], [], []>} : vector<16x32xbf16>, vector<16x32xbf16>, vector<16x16xf32> -> vector<16x16xf32>
    %cst_23 = arith.constant 0.176776692 : f32
    %44 = vector.broadcast %cst_23 : f32 to vector<16x16xf32>
    %45 = arith.mulf %43, %44 : vector<16x16xf32>
    %46 = arith.addf %45, %23 : vector<16x16xf32>
    %cst_24 = arith.constant dense<0xFF800000> : vector<16xf32>
    %47 = vector.multi_reduction <maximumf>, %46, %cst_24 [1] : vector<16x16xf32> to vector<16xf32>
    %48 = vector.shape_cast %47 : vector<16xf32> to vector<16x1xf32>
    %49 = vector.broadcast %48 : vector<16x1xf32> to vector<16x16xf32>
    %50 = arith.subf %46, %49 : vector<16x16xf32>
    %51 = math.exp %50 : vector<16x16xf32>
    %cst_25 = arith.constant dense<0.000000e+00> : vector<16xf32>
    %52 = vector.multi_reduction <add>, %51, %cst_25 [1] : vector<16x16xf32> to vector<16xf32>
    %53 = vector.shape_cast %52 : vector<16xf32> to vector<16x1xf32>
    %54 = tpu.reciprocal %53 {approx = true} : vector<16x1xf32> -> vector<16x1xf32>
    %55 = vector.broadcast %54 : vector<16x1xf32> to vector<16x16xf32>
    %56 = arith.mulf %51, %55 : vector<16x16xf32>
    %57 = arith.truncf %56 : vector<16x16xf32> to vector<16x16xbf16>
    %58 = arith.truncf %40 : vector<16x32xf32> to vector<16x32xbf16>
    %cst_26 = arith.constant dense<0.000000e+00> : vector<16x32xf32>
    %59 = tpu.matmul %57, %58, %cst_26 {dimension_numbers = #tpu.dot_dimension_numbers<[1], [0], [0], [1], [0, 0, 1, 1], [], []>} : vector<16x16xbf16>, vector<16x32xbf16>, vector<16x32xf32> -> vector<16x32xf32>
    %60 = vector.extract_strided_slice %36 {offsets = [0, 0], sizes = [32, 128], strides = [1, 1]} : vector<128x128xbf16> to vector<32x128xbf16>
    %61 = arith.truncf %59 : vector<16x32xf32> to vector<16x32xbf16>
    %cst_27 = arith.constant dense<0.000000e+00> : vector<16x128xf32>
    %62 = tpu.matmul %61, %60, %cst_27 {dimension_numbers = #tpu.dot_dimension_numbers<[1], [0], [0], [1], [0, 0, 1, 1], [], []>} : vector<16x32xbf16>, vector<32x128xbf16>, vector<16x128xf32> -> vector<16x128xf32>
    %63 = arith.addf %37, %62 : vector<16x128xf32>
    %64 = vector.extract_strided_slice %32 {offsets = [0, 32], sizes = [16, 32], strides = [1, 1]} : vector<16x128xf32> to vector<16x32xf32>
    %65 = vector.extract_strided_slice %33 {offsets = [0, 32], sizes = [16, 32], strides = [1, 1]} : vector<16x128xf32> to vector<16x32xf32>
    %66 = vector.extract_strided_slice %34 {offsets = [0, 32], sizes = [16, 32], strides = [1, 1]} : vector<16x128xf32> to vector<16x32xf32>
    %67 = arith.truncf %64 : vector<16x32xf32> to vector<16x32xbf16>
    %68 = arith.truncf %65 : vector<16x32xf32> to vector<16x32xbf16>
    %cst_28 = arith.constant dense<0.000000e+00> : vector<16x16xf32>
    %69 = tpu.matmul %67, %68, %cst_28 {dimension_numbers = #tpu.dot_dimension_numbers<[1], [1], [0], [0], [0, 0, 1, 0], [], []>} : vector<16x32xbf16>, vector<16x32xbf16>, vector<16x16xf32> -> vector<16x16xf32>
    %cst_29 = arith.constant 0.176776692 : f32
    %70 = vector.broadcast %cst_29 : f32 to vector<16x16xf32>
    %71 = arith.mulf %69, %70 : vector<16x16xf32>
    %72 = arith.addf %71, %23 : vector<16x16xf32>
    %cst_30 = arith.constant dense<0xFF800000> : vector<16xf32>
    %73 = vector.multi_reduction <maximumf>, %72, %cst_30 [1] : vector<16x16xf32> to vector<16xf32>
    %74 = vector.shape_cast %73 : vector<16xf32> to vector<16x1xf32>
    %75 = vector.broadcast %74 : vector<16x1xf32> to vector<16x16xf32>
    %76 = arith.subf %72, %75 : vector<16x16xf32>
    %77 = math.exp %76 : vector<16x16xf32>
    %cst_31 = arith.constant dense<0.000000e+00> : vector<16xf32>
    %78 = vector.multi_reduction <add>, %77, %cst_31 [1] : vector<16x16xf32> to vector<16xf32>
    %79 = vector.shape_cast %78 : vector<16xf32> to vector<16x1xf32>
    %80 = tpu.reciprocal %79 {approx = true} : vector<16x1xf32> -> vector<16x1xf32>
    %81 = vector.broadcast %80 : vector<16x1xf32> to vector<16x16xf32>
    %82 = arith.mulf %77, %81 : vector<16x16xf32>
    %83 = arith.truncf %82 : vector<16x16xf32> to vector<16x16xbf16>
    %84 = arith.truncf %66 : vector<16x32xf32> to vector<16x32xbf16>
    %cst_32 = arith.constant dense<0.000000e+00> : vector<16x32xf32>
    %85 = tpu.matmul %83, %84, %cst_32 {dimension_numbers = #tpu.dot_dimension_numbers<[1], [0], [0], [1], [0, 0, 1, 1], [], []>} : vector<16x16xbf16>, vector<16x32xbf16>, vector<16x32xf32> -> vector<16x32xf32>
    %86 = vector.extract_strided_slice %36 {offsets = [32, 0], sizes = [32, 128], strides = [1, 1]} : vector<128x128xbf16> to vector<32x128xbf16>
    %87 = arith.truncf %85 : vector<16x32xf32> to vector<16x32xbf16>
    %cst_33 = arith.constant dense<0.000000e+00> : vector<16x128xf32>
    %88 = tpu.matmul %87, %86, %cst_33 {dimension_numbers = #tpu.dot_dimension_numbers<[1], [0], [0], [1], [0, 0, 1, 1], [], []>} : vector<16x32xbf16>, vector<32x128xbf16>, vector<16x128xf32> -> vector<16x128xf32>
    %89 = arith.addf %63, %88 : vector<16x128xf32>
    %90 = vector.extract_strided_slice %32 {offsets = [0, 64], sizes = [16, 32], strides = [1, 1]} : vector<16x128xf32> to vector<16x32xf32>
    %91 = vector.extract_strided_slice %33 {offsets = [0, 64], sizes = [16, 32], strides = [1, 1]} : vector<16x128xf32> to vector<16x32xf32>
    %92 = vector.extract_strided_slice %34 {offsets = [0, 64], sizes = [16, 32], strides = [1, 1]} : vector<16x128xf32> to vector<16x32xf32>
    %93 = arith.truncf %90 : vector<16x32xf32> to vector<16x32xbf16>
    %94 = arith.truncf %91 : vector<16x32xf32> to vector<16x32xbf16>
    %cst_34 = arith.constant dense<0.000000e+00> : vector<16x16xf32>
    %95 = tpu.matmul %93, %94, %cst_34 {dimension_numbers = #tpu.dot_dimension_numbers<[1], [1], [0], [0], [0, 0, 1, 0], [], []>} : vector<16x32xbf16>, vector<16x32xbf16>, vector<16x16xf32> -> vector<16x16xf32>
    %cst_35 = arith.constant 0.176776692 : f32
    %96 = vector.broadcast %cst_35 : f32 to vector<16x16xf32>
    %97 = arith.mulf %95, %96 : vector<16x16xf32>
    %98 = arith.addf %97, %23 : vector<16x16xf32>
    %cst_36 = arith.constant dense<0xFF800000> : vector<16xf32>
    %99 = vector.multi_reduction <maximumf>, %98, %cst_36 [1] : vector<16x16xf32> to vector<16xf32>
    %100 = vector.shape_cast %99 : vector<16xf32> to vector<16x1xf32>
    %101 = vector.broadcast %100 : vector<16x1xf32> to vector<16x16xf32>
    %102 = arith.subf %98, %101 : vector<16x16xf32>
    %103 = math.exp %102 : vector<16x16xf32>
    %cst_37 = arith.constant dense<0.000000e+00> : vector<16xf32>
    %104 = vector.multi_reduction <add>, %103, %cst_37 [1] : vector<16x16xf32> to vector<16xf32>
    %105 = vector.shape_cast %104 : vector<16xf32> to vector<16x1xf32>
    %106 = tpu.reciprocal %105 {approx = true} : vector<16x1xf32> -> vector<16x1xf32>
    %107 = vector.broadcast %106 : vector<16x1xf32> to vector<16x16xf32>
    %108 = arith.mulf %103, %107 : vector<16x16xf32>
    %109 = arith.truncf %108 : vector<16x16xf32> to vector<16x16xbf16>
    %110 = arith.truncf %92 : vector<16x32xf32> to vector<16x32xbf16>
    %cst_38 = arith.constant dense<0.000000e+00> : vector<16x32xf32>
    %111 = tpu.matmul %109, %110, %cst_38 {dimension_numbers = #tpu.dot_dimension_numbers<[1], [0], [0], [1], [0, 0, 1, 1], [], []>} : vector<16x16xbf16>, vector<16x32xbf16>, vector<16x32xf32> -> vector<16x32xf32>
    %112 = vector.extract_strided_slice %36 {offsets = [64, 0], sizes = [32, 128], strides = [1, 1]} : vector<128x128xbf16> to vector<32x128xbf16>
    %113 = arith.truncf %111 : vector<16x32xf32> to vector<16x32xbf16>
    %cst_39 = arith.constant dense<0.000000e+00> : vector<16x128xf32>
    %114 = tpu.matmul %113, %112, %cst_39 {dimension_numbers = #tpu.dot_dimension_numbers<[1], [0], [0], [1], [0, 0, 1, 1], [], []>} : vector<16x32xbf16>, vector<32x128xbf16>, vector<16x128xf32> -> vector<16x128xf32>
    %115 = arith.addf %89, %114 : vector<16x128xf32>
    %116 = vector.extract_strided_slice %32 {offsets = [0, 96], sizes = [16, 32], strides = [1, 1]} : vector<16x128xf32> to vector<16x32xf32>
    %117 = vector.extract_strided_slice %33 {offsets = [0, 96], sizes = [16, 32], strides = [1, 1]} : vector<16x128xf32> to vector<16x32xf32>
    %118 = vector.extract_strided_slice %34 {offsets = [0, 96], sizes = [16, 32], strides = [1, 1]} : vector<16x128xf32> to vector<16x32xf32>
    %119 = arith.truncf %116 : vector<16x32xf32> to vector<16x32xbf16>
    %120 = arith.truncf %117 : vector<16x32xf32> to vector<16x32xbf16>
    %cst_40 = arith.constant dense<0.000000e+00> : vector<16x16xf32>
    %121 = tpu.matmul %119, %120, %cst_40 {dimension_numbers = #tpu.dot_dimension_numbers<[1], [1], [0], [0], [0, 0, 1, 0], [], []>} : vector<16x32xbf16>, vector<16x32xbf16>, vector<16x16xf32> -> vector<16x16xf32>
    %cst_41 = arith.constant 0.176776692 : f32
    %122 = vector.broadcast %cst_41 : f32 to vector<16x16xf32>
    %123 = arith.mulf %121, %122 : vector<16x16xf32>
    %124 = arith.addf %123, %23 : vector<16x16xf32>
    %cst_42 = arith.constant dense<0xFF800000> : vector<16xf32>
    %125 = vector.multi_reduction <maximumf>, %124, %cst_42 [1] : vector<16x16xf32> to vector<16xf32>
    %126 = vector.shape_cast %125 : vector<16xf32> to vector<16x1xf32>
    %127 = vector.broadcast %126 : vector<16x1xf32> to vector<16x16xf32>
    %128 = arith.subf %124, %127 : vector<16x16xf32>
    %129 = math.exp %128 : vector<16x16xf32>
    %cst_43 = arith.constant dense<0.000000e+00> : vector<16xf32>
    %130 = vector.multi_reduction <add>, %129, %cst_43 [1] : vector<16x16xf32> to vector<16xf32>
    %131 = vector.shape_cast %130 : vector<16xf32> to vector<16x1xf32>
    %132 = tpu.reciprocal %131 {approx = true} : vector<16x1xf32> -> vector<16x1xf32>
    %133 = vector.broadcast %132 : vector<16x1xf32> to vector<16x16xf32>
    %134 = arith.mulf %129, %133 : vector<16x16xf32>
    %135 = arith.truncf %134 : vector<16x16xf32> to vector<16x16xbf16>
    %136 = arith.truncf %118 : vector<16x32xf32> to vector<16x32xbf16>
    %cst_44 = arith.constant dense<0.000000e+00> : vector<16x32xf32>
    %137 = tpu.matmul %135, %136, %cst_44 {dimension_numbers = #tpu.dot_dimension_numbers<[1], [0], [0], [1], [0, 0, 1, 1], [], []>} : vector<16x16xbf16>, vector<16x32xbf16>, vector<16x32xf32> -> vector<16x32xf32>
    %138 = vector.extract_strided_slice %36 {offsets = [96, 0], sizes = [32, 128], strides = [1, 1]} : vector<128x128xbf16> to vector<32x128xbf16>
    %139 = arith.truncf %137 : vector<16x32xf32> to vector<16x32xbf16>
    %cst_45 = arith.constant dense<0.000000e+00> : vector<16x128xf32>
    %140 = tpu.matmul %139, %138, %cst_45 {dimension_numbers = #tpu.dot_dimension_numbers<[1], [0], [0], [1], [0, 0, 1, 1], [], []>} : vector<16x32xbf16>, vector<32x128xbf16>, vector<16x128xf32> -> vector<16x128xf32>
    %141 = arith.addf %115, %140 : vector<16x128xf32>
    %c0_46 = arith.constant 0 : index
    %c0_47 = arith.constant 0 : index
    %c0_48 = arith.constant 0 : index
    %142 = vector.load %arg5[%c0_46, %c0_47, %c0_48] : memref<2x1x128xf32, #tpu.memory_space<vmem>>, vector<1x1x128xf32>
    %143 = vector.shape_cast %142 : vector<1x1x128xf32> to vector<1x128xf32>
    %144 = vector.broadcast %143 : vector<1x128xf32> to vector<16x128xf32>
    %145 = arith.addf %141, %144 : vector<16x128xf32>
    %146 = arith.addf %145, %22 : vector<16x128xf32>
    %c0_49 = arith.constant 0 : index
    %c0_50 = arith.constant 0 : index
    %c0_51 = arith.constant 0 : index
    %147 = vector.load %arg6[%c0_49, %c0_50, %c0_51] : memref<2x1x128xf32, #tpu.memory_space<vmem>>, vector<1x1x128xf32>
    %148 = vector.shape_cast %147 : vector<1x1x128xf32> to vector<1x128xf32>
    %c0_52 = arith.constant 0 : index
    %c0_53 = arith.constant 0 : index
    %c0_54 = arith.constant 0 : index
    %149 = vector.load %arg7[%c0_52, %c0_53, %c0_54] : memref<2x1x128xf32, #tpu.memory_space<vmem>>, vector<1x1x128xf32>
    %150 = vector.shape_cast %149 : vector<1x1x128xf32> to vector<1x128xf32>
    %cst_55 = arith.constant dense<0.000000e+00> : vector<16xf32>
    %151 = vector.multi_reduction <add>, %146, %cst_55 [1] : vector<16x128xf32> to vector<16xf32>
    %152 = vector.shape_cast %151 : vector<16xf32> to vector<16x1xf32>
    %cst_56 = arith.constant 1.280000e+02 : f32
    %153 = vector.broadcast %cst_56 : f32 to vector<16x1xf32>
    %154 = arith.divf %152, %153 : vector<16x1xf32>
    %155 = vector.broadcast %154 : vector<16x1xf32> to vector<16x128xf32>
    %156 = arith.subf %146, %155 : vector<16x128xf32>
    %157 = arith.mulf %156, %156 : vector<16x128xf32>
    %cst_57 = arith.constant dense<0.000000e+00> : vector<16xf32>
    %158 = vector.multi_reduction <add>, %157, %cst_57 [1] : vector<16x128xf32> to vector<16xf32>
    %159 = vector.shape_cast %158 : vector<16xf32> to vector<16x1xf32>
    %cst_58 = arith.constant 1.280000e+02 : f32
    %160 = vector.broadcast %cst_58 : f32 to vector<16x1xf32>
    %161 = arith.divf %159, %160 : vector<16x1xf32>
    %cst_59 = arith.constant 9.99999996E-13 : f32
    %162 = vector.broadcast %cst_59 : f32 to vector<16x1xf32>
    %163 = arith.addf %161, %162 : vector<16x1xf32>
    %164 = math.rsqrt %163 : vector<16x1xf32>
    %165 = vector.broadcast %164 : vector<16x1xf32> to vector<16x128xf32>
    %166 = arith.mulf %156, %165 : vector<16x128xf32>
    %167 = vector.broadcast %148 : vector<1x128xf32> to vector<16x128xf32>
    %168 = arith.mulf %166, %167 : vector<16x128xf32>
    %169 = vector.broadcast %150 : vector<1x128xf32> to vector<16x128xf32>
    %170 = arith.addf %168, %169 : vector<16x128xf32>
    %c0_60 = arith.constant 0 : index
    %c0_61 = arith.constant 0 : index
    %c0_62 = arith.constant 0 : index
    %171 = vector.load %arg8[%c0_60, %c0_61, %c0_62] : memref<2x128x256xbf16, #tpu.memory_space<vmem>>, vector<1x128x256xbf16>
    %172 = vector.shape_cast %171 : vector<1x128x256xbf16> to vector<128x256xbf16>
    %173 = arith.truncf %170 : vector<16x128xf32> to vector<16x128xbf16>
    %cst_63 = arith.constant dense<0.000000e+00> : vector<16x256xf32>
    %174 = tpu.matmul %173, %172, %cst_63 {dimension_numbers = #tpu.dot_dimension_numbers<[1], [0], [0], [1], [0, 0, 1, 1], [], []>} : vector<16x128xbf16>, vector<128x256xbf16>, vector<16x256xf32> -> vector<16x256xf32>
    %c0_64 = arith.constant 0 : index
    %c0_65 = arith.constant 0 : index
    %c0_66 = arith.constant 0 : index
    %175 = vector.load %arg9[%c0_64, %c0_65, %c0_66] : memref<2x1x256xf32, #tpu.memory_space<vmem>>, vector<1x1x256xf32>
    %176 = vector.shape_cast %175 : vector<1x1x256xf32> to vector<1x256xf32>
    %177 = vector.broadcast %176 : vector<1x256xf32> to vector<16x256xf32>
    %178 = arith.addf %174, %177 : vector<16x256xf32>
    %cst_67 = arith.constant 5.000000e-01 : f32
    %179 = vector.broadcast %cst_67 : f32 to vector<16x256xf32>
    %180 = arith.mulf %179, %178 : vector<16x256xf32>
    %cst_68 = arith.constant 4.471500e-02 : f32
    %181 = vector.broadcast %cst_68 : f32 to vector<16x256xf32>
    %182 = arith.mulf %181, %178 : vector<16x256xf32>
    %183 = arith.mulf %182, %178 : vector<16x256xf32>
    %184 = arith.mulf %183, %178 : vector<16x256xf32>
    %185 = arith.addf %178, %184 : vector<16x256xf32>
    %cst_69 = arith.constant 0.797884583 : f32
    %186 = vector.broadcast %cst_69 : f32 to vector<16x256xf32>
    %187 = arith.mulf %186, %185 : vector<16x256xf32>
    %188 = math.tanh %187 : vector<16x256xf32>
    %cst_70 = arith.constant 1.000000e+00 : f32
    %189 = vector.broadcast %cst_70 : f32 to vector<16x256xf32>
    %190 = arith.addf %189, %188 : vector<16x256xf32>
    %191 = arith.mulf %180, %190 : vector<16x256xf32>
    %c0_71 = arith.constant 0 : index
    %c0_72 = arith.constant 0 : index
    %c0_73 = arith.constant 0 : index
    %192 = vector.load %arg10[%c0_71, %c0_72, %c0_73] : memref<2x256x128xbf16, #tpu.memory_space<vmem>>, vector<1x256x128xbf16>
    %193 = vector.shape_cast %192 : vector<1x256x128xbf16> to vector<256x128xbf16>
    %194 = arith.truncf %191 : vector<16x256xf32> to vector<16x256xbf16>
    %cst_74 = arith.constant dense<0.000000e+00> : vector<16x128xf32>
    %195 = tpu.matmul %194, %193, %cst_74 {dimension_numbers = #tpu.dot_dimension_numbers<[1], [0], [0], [1], [0, 0, 1, 1], [], []>} : vector<16x256xbf16>, vector<256x128xbf16>, vector<16x128xf32> -> vector<16x128xf32>
    %c0_75 = arith.constant 0 : index
    %c0_76 = arith.constant 0 : index
    %c0_77 = arith.constant 0 : index
    %196 = vector.load %arg11[%c0_75, %c0_76, %c0_77] : memref<2x1x128xf32, #tpu.memory_space<vmem>>, vector<1x1x128xf32>
    %197 = vector.shape_cast %196 : vector<1x1x128xf32> to vector<1x128xf32>
    %198 = vector.broadcast %197 : vector<1x128xf32> to vector<16x128xf32>
    %199 = arith.addf %195, %198 : vector<16x128xf32>
    %200 = arith.addf %199, %170 : vector<16x128xf32>
    %c0_78 = arith.constant 0 : index
    %c0_79 = arith.constant 0 : index
    %c0_80 = arith.constant 0 : index
    %201 = vector.load %arg12[%c0_78, %c0_79, %c0_80] : memref<2x1x128xf32, #tpu.memory_space<vmem>>, vector<1x1x128xf32>
    %202 = vector.shape_cast %201 : vector<1x1x128xf32> to vector<1x128xf32>
    %c0_81 = arith.constant 0 : index
    %c0_82 = arith.constant 0 : index
    %c0_83 = arith.constant 0 : index
    %203 = vector.load %arg13[%c0_81, %c0_82, %c0_83] : memref<2x1x128xf32, #tpu.memory_space<vmem>>, vector<1x1x128xf32>
    %204 = vector.shape_cast %203 : vector<1x1x128xf32> to vector<1x128xf32>
    %cst_84 = arith.constant dense<0.000000e+00> : vector<16xf32>
    %205 = vector.multi_reduction <add>, %200, %cst_84 [1] : vector<16x128xf32> to vector<16xf32>
    %206 = vector.shape_cast %205 : vector<16xf32> to vector<16x1xf32>
    %cst_85 = arith.constant 1.280000e+02 : f32
    %207 = vector.broadcast %cst_85 : f32 to vector<16x1xf32>
    %208 = arith.divf %206, %207 : vector<16x1xf32>
    %209 = vector.broadcast %208 : vector<16x1xf32> to vector<16x128xf32>
    %210 = arith.subf %200, %209 : vector<16x128xf32>
    %211 = arith.mulf %210, %210 : vector<16x128xf32>
    %cst_86 = arith.constant dense<0.000000e+00> : vector<16xf32>
    %212 = vector.multi_reduction <add>, %211, %cst_86 [1] : vector<16x128xf32> to vector<16xf32>
    %213 = vector.shape_cast %212 : vector<16xf32> to vector<16x1xf32>
    %cst_87 = arith.constant 1.280000e+02 : f32
    %214 = vector.broadcast %cst_87 : f32 to vector<16x1xf32>
    %215 = arith.divf %213, %214 : vector<16x1xf32>
    %cst_88 = arith.constant 9.99999996E-13 : f32
    %216 = vector.broadcast %cst_88 : f32 to vector<16x1xf32>
    %217 = arith.addf %215, %216 : vector<16x1xf32>
    %218 = math.rsqrt %217 : vector<16x1xf32>
    %219 = vector.broadcast %218 : vector<16x1xf32> to vector<16x128xf32>
    %220 = arith.mulf %210, %219 : vector<16x128xf32>
    %221 = vector.broadcast %202 : vector<1x128xf32> to vector<16x128xf32>
    %222 = arith.mulf %220, %221 : vector<16x128xf32>
    %223 = vector.broadcast %204 : vector<1x128xf32> to vector<16x128xf32>
    %224 = arith.addf %222, %223 : vector<16x128xf32>
    %c1 = arith.constant 1 : index
    %c0_89 = arith.constant 0 : index
    %c0_90 = arith.constant 0 : index
    %225 = vector.load %arg2[%c1, %c0_89, %c0_90] : memref<2x128x384xbf16, #tpu.memory_space<vmem>>, vector<1x128x384xbf16>
    %226 = vector.shape_cast %225 : vector<1x128x384xbf16> to vector<128x384xbf16>
    %227 = arith.truncf %224 : vector<16x128xf32> to vector<16x128xbf16>
    %cst_91 = arith.constant dense<0.000000e+00> : vector<16x384xf32>
    %228 = tpu.matmul %227, %226, %cst_91 {dimension_numbers = #tpu.dot_dimension_numbers<[1], [0], [0], [1], [0, 0, 1, 1], [], []>} : vector<16x128xbf16>, vector<128x384xbf16>, vector<16x384xf32> -> vector<16x384xf32>
    %c1_92 = arith.constant 1 : index
    %c0_93 = arith.constant 0 : index
    %c0_94 = arith.constant 0 : index
    %229 = vector.load %arg3[%c1_92, %c0_93, %c0_94] : memref<2x1x384xf32, #tpu.memory_space<vmem>>, vector<1x1x384xf32>
    %230 = vector.shape_cast %229 : vector<1x1x384xf32> to vector<1x384xf32>
    %231 = vector.broadcast %230 : vector<1x384xf32> to vector<16x384xf32>
    %232 = arith.addf %228, %231 : vector<16x384xf32>
    %233 = vector.extract_strided_slice %232 {offsets = [0, 0], sizes = [16, 128], strides = [1, 1]} : vector<16x384xf32> to vector<16x128xf32>
    %234 = vector.extract_strided_slice %232 {offsets = [0, 128], sizes = [16, 128], strides = [1, 1]} : vector<16x384xf32> to vector<16x128xf32>
    %235 = vector.extract_strided_slice %232 {offsets = [0, 256], sizes = [16, 128], strides = [1, 1]} : vector<16x384xf32> to vector<16x128xf32>
    %c1_95 = arith.constant 1 : index
    %c0_96 = arith.constant 0 : index
    %c0_97 = arith.constant 0 : index
    %236 = vector.load %arg4[%c1_95, %c0_96, %c0_97] : memref<2x128x128xbf16, #tpu.memory_space<vmem>>, vector<1x128x128xbf16>
    %237 = vector.shape_cast %236 : vector<1x128x128xbf16> to vector<128x128xbf16>
    %cst_98 = arith.constant 0.000000e+00 : f32
    %238 = vector.broadcast %cst_98 : f32 to vector<16x128xf32>
    %239 = vector.extract_strided_slice %233 {offsets = [0, 0], sizes = [16, 32], strides = [1, 1]} : vector<16x128xf32> to vector<16x32xf32>
    %240 = vector.extract_strided_slice %234 {offsets = [0, 0], sizes = [16, 32], strides = [1, 1]} : vector<16x128xf32> to vector<16x32xf32>
    %241 = vector.extract_strided_slice %235 {offsets = [0, 0], sizes = [16, 32], strides = [1, 1]} : vector<16x128xf32> to vector<16x32xf32>
    %242 = arith.truncf %239 : vector<16x32xf32> to vector<16x32xbf16>
    %243 = arith.truncf %240 : vector<16x32xf32> to vector<16x32xbf16>
    %cst_99 = arith.constant dense<0.000000e+00> : vector<16x16xf32>
    %244 = tpu.matmul %242, %243, %cst_99 {dimension_numbers = #tpu.dot_dimension_numbers<[1], [1], [0], [0], [0, 0, 1, 0], [], []>} : vector<16x32xbf16>, vector<16x32xbf16>, vector<16x16xf32> -> vector<16x16xf32>
    %cst_100 = arith.constant 0.176776692 : f32
    %245 = vector.broadcast %cst_100 : f32 to vector<16x16xf32>
    %246 = arith.mulf %244, %245 : vector<16x16xf32>
    %247 = arith.addf %246, %23 : vector<16x16xf32>
    %cst_101 = arith.constant dense<0xFF800000> : vector<16xf32>
    %248 = vector.multi_reduction <maximumf>, %247, %cst_101 [1] : vector<16x16xf32> to vector<16xf32>
    %249 = vector.shape_cast %248 : vector<16xf32> to vector<16x1xf32>
    %250 = vector.broadcast %249 : vector<16x1xf32> to vector<16x16xf32>
    %251 = arith.subf %247, %250 : vector<16x16xf32>
    %252 = math.exp %251 : vector<16x16xf32>
    %cst_102 = arith.constant dense<0.000000e+00> : vector<16xf32>
    %253 = vector.multi_reduction <add>, %252, %cst_102 [1] : vector<16x16xf32> to vector<16xf32>
    %254 = vector.shape_cast %253 : vector<16xf32> to vector<16x1xf32>
    %255 = tpu.reciprocal %254 {approx = true} : vector<16x1xf32> -> vector<16x1xf32>
    %256 = vector.broadcast %255 : vector<16x1xf32> to vector<16x16xf32>
    %257 = arith.mulf %252, %256 : vector<16x16xf32>
    %258 = arith.truncf %257 : vector<16x16xf32> to vector<16x16xbf16>
    %259 = arith.truncf %241 : vector<16x32xf32> to vector<16x32xbf16>
    %cst_103 = arith.constant dense<0.000000e+00> : vector<16x32xf32>
    %260 = tpu.matmul %258, %259, %cst_103 {dimension_numbers = #tpu.dot_dimension_numbers<[1], [0], [0], [1], [0, 0, 1, 1], [], []>} : vector<16x16xbf16>, vector<16x32xbf16>, vector<16x32xf32> -> vector<16x32xf32>
    %261 = vector.extract_strided_slice %237 {offsets = [0, 0], sizes = [32, 128], strides = [1, 1]} : vector<128x128xbf16> to vector<32x128xbf16>
    %262 = arith.truncf %260 : vector<16x32xf32> to vector<16x32xbf16>
    %cst_104 = arith.constant dense<0.000000e+00> : vector<16x128xf32>
    %263 = tpu.matmul %262, %261, %cst_104 {dimension_numbers = #tpu.dot_dimension_numbers<[1], [0], [0], [1], [0, 0, 1, 1], [], []>} : vector<16x32xbf16>, vector<32x128xbf16>, vector<16x128xf32> -> vector<16x128xf32>
    %264 = arith.addf %238, %263 : vector<16x128xf32>
    %265 = vector.extract_strided_slice %233 {offsets = [0, 32], sizes = [16, 32], strides = [1, 1]} : vector<16x128xf32> to vector<16x32xf32>
    %266 = vector.extract_strided_slice %234 {offsets = [0, 32], sizes = [16, 32], strides = [1, 1]} : vector<16x128xf32> to vector<16x32xf32>
    %267 = vector.extract_strided_slice %235 {offsets = [0, 32], sizes = [16, 32], strides = [1, 1]} : vector<16x128xf32> to vector<16x32xf32>
    %268 = arith.truncf %265 : vector<16x32xf32> to vector<16x32xbf16>
    %269 = arith.truncf %266 : vector<16x32xf32> to vector<16x32xbf16>
    %cst_105 = arith.constant dense<0.000000e+00> : vector<16x16xf32>
    %270 = tpu.matmul %268, %269, %cst_105 {dimension_numbers = #tpu.dot_dimension_numbers<[1], [1], [0], [0], [0, 0, 1, 0], [], []>} : vector<16x32xbf16>, vector<16x32xbf16>, vector<16x16xf32> -> vector<16x16xf32>
    %cst_106 = arith.constant 0.176776692 : f32
    %271 = vector.broadcast %cst_106 : f32 to vector<16x16xf32>
    %272 = arith.mulf %270, %271 : vector<16x16xf32>
    %273 = arith.addf %272, %23 : vector<16x16xf32>
    %cst_107 = arith.constant dense<0xFF800000> : vector<16xf32>
    %274 = vector.multi_reduction <maximumf>, %273, %cst_107 [1] : vector<16x16xf32> to vector<16xf32>
    %275 = vector.shape_cast %274 : vector<16xf32> to vector<16x1xf32>
    %276 = vector.broadcast %275 : vector<16x1xf32> to vector<16x16xf32>
    %277 = arith.subf %273, %276 : vector<16x16xf32>
    %278 = math.exp %277 : vector<16x16xf32>
    %cst_108 = arith.constant dense<0.000000e+00> : vector<16xf32>
    %279 = vector.multi_reduction <add>, %278, %cst_108 [1] : vector<16x16xf32> to vector<16xf32>
    %280 = vector.shape_cast %279 : vector<16xf32> to vector<16x1xf32>
    %281 = tpu.reciprocal %280 {approx = true} : vector<16x1xf32> -> vector<16x1xf32>
    %282 = vector.broadcast %281 : vector<16x1xf32> to vector<16x16xf32>
    %283 = arith.mulf %278, %282 : vector<16x16xf32>
    %284 = arith.truncf %283 : vector<16x16xf32> to vector<16x16xbf16>
    %285 = arith.truncf %267 : vector<16x32xf32> to vector<16x32xbf16>
    %cst_109 = arith.constant dense<0.000000e+00> : vector<16x32xf32>
    %286 = tpu.matmul %284, %285, %cst_109 {dimension_numbers = #tpu.dot_dimension_numbers<[1], [0], [0], [1], [0, 0, 1, 1], [], []>} : vector<16x16xbf16>, vector<16x32xbf16>, vector<16x32xf32> -> vector<16x32xf32>
    %287 = vector.extract_strided_slice %237 {offsets = [32, 0], sizes = [32, 128], strides = [1, 1]} : vector<128x128xbf16> to vector<32x128xbf16>
    %288 = arith.truncf %286 : vector<16x32xf32> to vector<16x32xbf16>
    %cst_110 = arith.constant dense<0.000000e+00> : vector<16x128xf32>
    %289 = tpu.matmul %288, %287, %cst_110 {dimension_numbers = #tpu.dot_dimension_numbers<[1], [0], [0], [1], [0, 0, 1, 1], [], []>} : vector<16x32xbf16>, vector<32x128xbf16>, vector<16x128xf32> -> vector<16x128xf32>
    %290 = arith.addf %264, %289 : vector<16x128xf32>
    %291 = vector.extract_strided_slice %233 {offsets = [0, 64], sizes = [16, 32], strides = [1, 1]} : vector<16x128xf32> to vector<16x32xf32>
    %292 = vector.extract_strided_slice %234 {offsets = [0, 64], sizes = [16, 32], strides = [1, 1]} : vector<16x128xf32> to vector<16x32xf32>
    %293 = vector.extract_strided_slice %235 {offsets = [0, 64], sizes = [16, 32], strides = [1, 1]} : vector<16x128xf32> to vector<16x32xf32>
    %294 = arith.truncf %291 : vector<16x32xf32> to vector<16x32xbf16>
    %295 = arith.truncf %292 : vector<16x32xf32> to vector<16x32xbf16>
    %cst_111 = arith.constant dense<0.000000e+00> : vector<16x16xf32>
    %296 = tpu.matmul %294, %295, %cst_111 {dimension_numbers = #tpu.dot_dimension_numbers<[1], [1], [0], [0], [0, 0, 1, 0], [], []>} : vector<16x32xbf16>, vector<16x32xbf16>, vector<16x16xf32> -> vector<16x16xf32>
    %cst_112 = arith.constant 0.176776692 : f32
    %297 = vector.broadcast %cst_112 : f32 to vector<16x16xf32>
    %298 = arith.mulf %296, %297 : vector<16x16xf32>
    %299 = arith.addf %298, %23 : vector<16x16xf32>
    %cst_113 = arith.constant dense<0xFF800000> : vector<16xf32>
    %300 = vector.multi_reduction <maximumf>, %299, %cst_113 [1] : vector<16x16xf32> to vector<16xf32>
    %301 = vector.shape_cast %300 : vector<16xf32> to vector<16x1xf32>
    %302 = vector.broadcast %301 : vector<16x1xf32> to vector<16x16xf32>
    %303 = arith.subf %299, %302 : vector<16x16xf32>
    %304 = math.exp %303 : vector<16x16xf32>
    %cst_114 = arith.constant dense<0.000000e+00> : vector<16xf32>
    %305 = vector.multi_reduction <add>, %304, %cst_114 [1] : vector<16x16xf32> to vector<16xf32>
    %306 = vector.shape_cast %305 : vector<16xf32> to vector<16x1xf32>
    %307 = tpu.reciprocal %306 {approx = true} : vector<16x1xf32> -> vector<16x1xf32>
    %308 = vector.broadcast %307 : vector<16x1xf32> to vector<16x16xf32>
    %309 = arith.mulf %304, %308 : vector<16x16xf32>
    %310 = arith.truncf %309 : vector<16x16xf32> to vector<16x16xbf16>
    %311 = arith.truncf %293 : vector<16x32xf32> to vector<16x32xbf16>
    %cst_115 = arith.constant dense<0.000000e+00> : vector<16x32xf32>
    %312 = tpu.matmul %310, %311, %cst_115 {dimension_numbers = #tpu.dot_dimension_numbers<[1], [0], [0], [1], [0, 0, 1, 1], [], []>} : vector<16x16xbf16>, vector<16x32xbf16>, vector<16x32xf32> -> vector<16x32xf32>
    %313 = vector.extract_strided_slice %237 {offsets = [64, 0], sizes = [32, 128], strides = [1, 1]} : vector<128x128xbf16> to vector<32x128xbf16>
    %314 = arith.truncf %312 : vector<16x32xf32> to vector<16x32xbf16>
    %cst_116 = arith.constant dense<0.000000e+00> : vector<16x128xf32>
    %315 = tpu.matmul %314, %313, %cst_116 {dimension_numbers = #tpu.dot_dimension_numbers<[1], [0], [0], [1], [0, 0, 1, 1], [], []>} : vector<16x32xbf16>, vector<32x128xbf16>, vector<16x128xf32> -> vector<16x128xf32>
    %316 = arith.addf %290, %315 : vector<16x128xf32>
    %317 = vector.extract_strided_slice %233 {offsets = [0, 96], sizes = [16, 32], strides = [1, 1]} : vector<16x128xf32> to vector<16x32xf32>
    %318 = vector.extract_strided_slice %234 {offsets = [0, 96], sizes = [16, 32], strides = [1, 1]} : vector<16x128xf32> to vector<16x32xf32>
    %319 = vector.extract_strided_slice %235 {offsets = [0, 96], sizes = [16, 32], strides = [1, 1]} : vector<16x128xf32> to vector<16x32xf32>
    %320 = arith.truncf %317 : vector<16x32xf32> to vector<16x32xbf16>
    %321 = arith.truncf %318 : vector<16x32xf32> to vector<16x32xbf16>
    %cst_117 = arith.constant dense<0.000000e+00> : vector<16x16xf32>
    %322 = tpu.matmul %320, %321, %cst_117 {dimension_numbers = #tpu.dot_dimension_numbers<[1], [1], [0], [0], [0, 0, 1, 0], [], []>} : vector<16x32xbf16>, vector<16x32xbf16>, vector<16x16xf32> -> vector<16x16xf32>
    %cst_118 = arith.constant 0.176776692 : f32
    %323 = vector.broadcast %cst_118 : f32 to vector<16x16xf32>
    %324 = arith.mulf %322, %323 : vector<16x16xf32>
    %325 = arith.addf %324, %23 : vector<16x16xf32>
    %cst_119 = arith.constant dense<0xFF800000> : vector<16xf32>
    %326 = vector.multi_reduction <maximumf>, %325, %cst_119 [1] : vector<16x16xf32> to vector<16xf32>
    %327 = vector.shape_cast %326 : vector<16xf32> to vector<16x1xf32>
    %328 = vector.broadcast %327 : vector<16x1xf32> to vector<16x16xf32>
    %329 = arith.subf %325, %328 : vector<16x16xf32>
    %330 = math.exp %329 : vector<16x16xf32>
    %cst_120 = arith.constant dense<0.000000e+00> : vector<16xf32>
    %331 = vector.multi_reduction <add>, %330, %cst_120 [1] : vector<16x16xf32> to vector<16xf32>
    %332 = vector.shape_cast %331 : vector<16xf32> to vector<16x1xf32>
    %333 = tpu.reciprocal %332 {approx = true} : vector<16x1xf32> -> vector<16x1xf32>
    %334 = vector.broadcast %333 : vector<16x1xf32> to vector<16x16xf32>
    %335 = arith.mulf %330, %334 : vector<16x16xf32>
    %336 = arith.truncf %335 : vector<16x16xf32> to vector<16x16xbf16>
    %337 = arith.truncf %319 : vector<16x32xf32> to vector<16x32xbf16>
    %cst_121 = arith.constant dense<0.000000e+00> : vector<16x32xf32>
    %338 = tpu.matmul %336, %337, %cst_121 {dimension_numbers = #tpu.dot_dimension_numbers<[1], [0], [0], [1], [0, 0, 1, 1], [], []>} : vector<16x16xbf16>, vector<16x32xbf16>, vector<16x32xf32> -> vector<16x32xf32>
    %339 = vector.extract_strided_slice %237 {offsets = [96, 0], sizes = [32, 128], strides = [1, 1]} : vector<128x128xbf16> to vector<32x128xbf16>
    %340 = arith.truncf %338 : vector<16x32xf32> to vector<16x32xbf16>
    %cst_122 = arith.constant dense<0.000000e+00> : vector<16x128xf32>
    %341 = tpu.matmul %340, %339, %cst_122 {dimension_numbers = #tpu.dot_dimension_numbers<[1], [0], [0], [1], [0, 0, 1, 1], [], []>} : vector<16x32xbf16>, vector<32x128xbf16>, vector<16x128xf32> -> vector<16x128xf32>
    %342 = arith.addf %316, %341 : vector<16x128xf32>
    %c1_123 = arith.constant 1 : index
    %c0_124 = arith.constant 0 : index
    %c0_125 = arith.constant 0 : index
    %343 = vector.load %arg5[%c1_123, %c0_124, %c0_125] : memref<2x1x128xf32, #tpu.memory_space<vmem>>, vector<1x1x128xf32>
    %344 = vector.shape_cast %343 : vector<1x1x128xf32> to vector<1x128xf32>
    %345 = vector.broadcast %344 : vector<1x128xf32> to vector<16x128xf32>
    %346 = arith.addf %342, %345 : vector<16x128xf32>
    %347 = arith.addf %346, %224 : vector<16x128xf32>
    %c1_126 = arith.constant 1 : index
    %c0_127 = arith.constant 0 : index
    %c0_128 = arith.constant 0 : index
    %348 = vector.load %arg6[%c1_126, %c0_127, %c0_128] : memref<2x1x128xf32, #tpu.memory_space<vmem>>, vector<1x1x128xf32>
    %349 = vector.shape_cast %348 : vector<1x1x128xf32> to vector<1x128xf32>
    %c1_129 = arith.constant 1 : index
    %c0_130 = arith.constant 0 : index
    %c0_131 = arith.constant 0 : index
    %350 = vector.load %arg7[%c1_129, %c0_130, %c0_131] : memref<2x1x128xf32, #tpu.memory_space<vmem>>, vector<1x1x128xf32>
    %351 = vector.shape_cast %350 : vector<1x1x128xf32> to vector<1x128xf32>
    %cst_132 = arith.constant dense<0.000000e+00> : vector<16xf32>
    %352 = vector.multi_reduction <add>, %347, %cst_132 [1] : vector<16x128xf32> to vector<16xf32>
    %353 = vector.shape_cast %352 : vector<16xf32> to vector<16x1xf32>
    %cst_133 = arith.constant 1.280000e+02 : f32
    %354 = vector.broadcast %cst_133 : f32 to vector<16x1xf32>
    %355 = arith.divf %353, %354 : vector<16x1xf32>
    %356 = vector.broadcast %355 : vector<16x1xf32> to vector<16x128xf32>
    %357 = arith.subf %347, %356 : vector<16x128xf32>
    %358 = arith.mulf %357, %357 : vector<16x128xf32>
    %cst_134 = arith.constant dense<0.000000e+00> : vector<16xf32>
    %359 = vector.multi_reduction <add>, %358, %cst_134 [1] : vector<16x128xf32> to vector<16xf32>
    %360 = vector.shape_cast %359 : vector<16xf32> to vector<16x1xf32>
    %cst_135 = arith.constant 1.280000e+02 : f32
    %361 = vector.broadcast %cst_135 : f32 to vector<16x1xf32>
    %362 = arith.divf %360, %361 : vector<16x1xf32>
    %cst_136 = arith.constant 9.99999996E-13 : f32
    %363 = vector.broadcast %cst_136 : f32 to vector<16x1xf32>
    %364 = arith.addf %362, %363 : vector<16x1xf32>
    %365 = math.rsqrt %364 : vector<16x1xf32>
    %366 = vector.broadcast %365 : vector<16x1xf32> to vector<16x128xf32>
    %367 = arith.mulf %357, %366 : vector<16x128xf32>
    %368 = vector.broadcast %349 : vector<1x128xf32> to vector<16x128xf32>
    %369 = arith.mulf %367, %368 : vector<16x128xf32>
    %370 = vector.broadcast %351 : vector<1x128xf32> to vector<16x128xf32>
    %371 = arith.addf %369, %370 : vector<16x128xf32>
    %c1_137 = arith.constant 1 : index
    %c0_138 = arith.constant 0 : index
    %c0_139 = arith.constant 0 : index
    %372 = vector.load %arg8[%c1_137, %c0_138, %c0_139] : memref<2x128x256xbf16, #tpu.memory_space<vmem>>, vector<1x128x256xbf16>
    %373 = vector.shape_cast %372 : vector<1x128x256xbf16> to vector<128x256xbf16>
    %374 = arith.truncf %371 : vector<16x128xf32> to vector<16x128xbf16>
    %cst_140 = arith.constant dense<0.000000e+00> : vector<16x256xf32>
    %375 = tpu.matmul %374, %373, %cst_140 {dimension_numbers = #tpu.dot_dimension_numbers<[1], [0], [0], [1], [0, 0, 1, 1], [], []>} : vector<16x128xbf16>, vector<128x256xbf16>, vector<16x256xf32> -> vector<16x256xf32>
    %c1_141 = arith.constant 1 : index
    %c0_142 = arith.constant 0 : index
    %c0_143 = arith.constant 0 : index
    %376 = vector.load %arg9[%c1_141, %c0_142, %c0_143] : memref<2x1x256xf32, #tpu.memory_space<vmem>>, vector<1x1x256xf32>
    %377 = vector.shape_cast %376 : vector<1x1x256xf32> to vector<1x256xf32>
    %378 = vector.broadcast %377 : vector<1x256xf32> to vector<16x256xf32>
    %379 = arith.addf %375, %378 : vector<16x256xf32>
    %cst_144 = arith.constant 5.000000e-01 : f32
    %380 = vector.broadcast %cst_144 : f32 to vector<16x256xf32>
    %381 = arith.mulf %380, %379 : vector<16x256xf32>
    %cst_145 = arith.constant 4.471500e-02 : f32
    %382 = vector.broadcast %cst_145 : f32 to vector<16x256xf32>
    %383 = arith.mulf %382, %379 : vector<16x256xf32>
    %384 = arith.mulf %383, %379 : vector<16x256xf32>
    %385 = arith.mulf %384, %379 : vector<16x256xf32>
    %386 = arith.addf %379, %385 : vector<16x256xf32>
    %cst_146 = arith.constant 0.797884583 : f32
    %387 = vector.broadcast %cst_146 : f32 to vector<16x256xf32>
    %388 = arith.mulf %387, %386 : vector<16x256xf32>
    %389 = math.tanh %388 : vector<16x256xf32>
    %cst_147 = arith.constant 1.000000e+00 : f32
    %390 = vector.broadcast %cst_147 : f32 to vector<16x256xf32>
    %391 = arith.addf %390, %389 : vector<16x256xf32>
    %392 = arith.mulf %381, %391 : vector<16x256xf32>
    %c1_148 = arith.constant 1 : index
    %c0_149 = arith.constant 0 : index
    %c0_150 = arith.constant 0 : index
    %393 = vector.load %arg10[%c1_148, %c0_149, %c0_150] : memref<2x256x128xbf16, #tpu.memory_space<vmem>>, vector<1x256x128xbf16>
    %394 = vector.shape_cast %393 : vector<1x256x128xbf16> to vector<256x128xbf16>
    %395 = arith.truncf %392 : vector<16x256xf32> to vector<16x256xbf16>
    %cst_151 = arith.constant dense<0.000000e+00> : vector<16x128xf32>
    %396 = tpu.matmul %395, %394, %cst_151 {dimension_numbers = #tpu.dot_dimension_numbers<[1], [0], [0], [1], [0, 0, 1, 1], [], []>} : vector<16x256xbf16>, vector<256x128xbf16>, vector<16x128xf32> -> vector<16x128xf32>
    %c1_152 = arith.constant 1 : index
    %c0_153 = arith.constant 0 : index
    %c0_154 = arith.constant 0 : index
    %397 = vector.load %arg11[%c1_152, %c0_153, %c0_154] : memref<2x1x128xf32, #tpu.memory_space<vmem>>, vector<1x1x128xf32>
    %398 = vector.shape_cast %397 : vector<1x1x128xf32> to vector<1x128xf32>
    %399 = vector.broadcast %398 : vector<1x128xf32> to vector<16x128xf32>
    %400 = arith.addf %396, %399 : vector<16x128xf32>
    %401 = arith.addf %400, %371 : vector<16x128xf32>
    %c1_155 = arith.constant 1 : index
    %c0_156 = arith.constant 0 : index
    %c0_157 = arith.constant 0 : index
    %402 = vector.load %arg12[%c1_155, %c0_156, %c0_157] : memref<2x1x128xf32, #tpu.memory_space<vmem>>, vector<1x1x128xf32>
    %403 = vector.shape_cast %402 : vector<1x1x128xf32> to vector<1x128xf32>
    %c1_158 = arith.constant 1 : index
    %c0_159 = arith.constant 0 : index
    %c0_160 = arith.constant 0 : index
    %404 = vector.load %arg13[%c1_158, %c0_159, %c0_160] : memref<2x1x128xf32, #tpu.memory_space<vmem>>, vector<1x1x128xf32>
    %405 = vector.shape_cast %404 : vector<1x1x128xf32> to vector<1x128xf32>
    %cst_161 = arith.constant dense<0.000000e+00> : vector<16xf32>
    %406 = vector.multi_reduction <add>, %401, %cst_161 [1] : vector<16x128xf32> to vector<16xf32>
    %407 = vector.shape_cast %406 : vector<16xf32> to vector<16x1xf32>
    %cst_162 = arith.constant 1.280000e+02 : f32
    %408 = vector.broadcast %cst_162 : f32 to vector<16x1xf32>
    %409 = arith.divf %407, %408 : vector<16x1xf32>
    %410 = vector.broadcast %409 : vector<16x1xf32> to vector<16x128xf32>
    %411 = arith.subf %401, %410 : vector<16x128xf32>
    %412 = arith.mulf %411, %411 : vector<16x128xf32>
    %cst_163 = arith.constant dense<0.000000e+00> : vector<16xf32>
    %413 = vector.multi_reduction <add>, %412, %cst_163 [1] : vector<16x128xf32> to vector<16xf32>
    %414 = vector.shape_cast %413 : vector<16xf32> to vector<16x1xf32>
    %cst_164 = arith.constant 1.280000e+02 : f32
    %415 = vector.broadcast %cst_164 : f32 to vector<16x1xf32>
    %416 = arith.divf %414, %415 : vector<16x1xf32>
    %cst_165 = arith.constant 9.99999996E-13 : f32
    %417 = vector.broadcast %cst_165 : f32 to vector<16x1xf32>
    %418 = arith.addf %416, %417 : vector<16x1xf32>
    %419 = math.rsqrt %418 : vector<16x1xf32>
    %420 = vector.broadcast %419 : vector<16x1xf32> to vector<16x128xf32>
    %421 = arith.mulf %411, %420 : vector<16x128xf32>
    %422 = vector.broadcast %403 : vector<1x128xf32> to vector<16x128xf32>
    %423 = arith.mulf %421, %422 : vector<16x128xf32>
    %424 = vector.broadcast %405 : vector<1x128xf32> to vector<16x128xf32>
    %425 = arith.addf %423, %424 : vector<16x128xf32>
    %426 = vector.extract_strided_slice %425 {offsets = [0, 0], sizes = [1, 128], strides = [1, 1]} : vector<16x128xf32> to vector<1x128xf32>
    %427 = vector.extract_strided_slice %425 {offsets = [8, 0], sizes = [1, 128], strides = [1, 1]} : vector<16x128xf32> to vector<1x128xf32>
    %428 = tpu.concatenate %426, %427 in 0 : vector<1x128xf32>, vector<1x128xf32> -> vector<2x128xf32>
    %c0_166 = arith.constant 0 : index
    %c0_167 = arith.constant 0 : index
    %429 = vector.load %arg16[%c0_166, %c0_167] : memref<128x128xbf16, #tpu.memory_space<vmem>>, vector<128x128xbf16>
    %430 = arith.truncf %428 : vector<2x128xf32> to vector<2x128xbf16>
    %cst_168 = arith.constant dense<0.000000e+00> : vector<2x128xf32>
    %431 = tpu.matmul %430, %429, %cst_168 {dimension_numbers = #tpu.dot_dimension_numbers<[1], [0], [0], [1], [0, 0, 1, 1], [], []>} : vector<2x128xbf16>, vector<128x128xbf16>, vector<2x128xf32> -> vector<2x128xf32>
    %c0_169 = arith.constant 0 : index
    %c0_170 = arith.constant 0 : index
    %432 = vector.load %arg17[%c0_169, %c0_170] : memref<1x128xf32, #tpu.memory_space<vmem>>, vector<1x128xf32>
    %433 = vector.broadcast %432 : vector<1x128xf32> to vector<2x128xf32>
    %434 = arith.addf %431, %433 : vector<2x128xf32>
    %c0_171 = arith.constant 0 : index
    %c0_172 = arith.constant 0 : index
    %435 = vector.load %arg18[%c0_171, %c0_172] : memref<2x128xf32, #tpu.memory_space<vmem>>, vector<2x128xf32>
    tpu.vector_store %arg18[%c0_171, %c0_172], %434 {strides = array<i32>} : memref<2x128xf32, #tpu.memory_space<vmem>>, vector<2x128xf32>,
    return
  }
}

</mosaic_0001>

<bundles_post_ra>
// kernel: bert_classifier_forward.1
= control target key start
LH: loop header
LB: loop body
LE: loop exit
PB: predicated region body
PF: predicated region fallthrough
CT: control target
= control target key end

     0   :  { %s4841_s0 = inlined_call_operand.vmem [shape: f32[16,128], index: 0, kind: input, shape index: {}]   ;;  %s4842_s1 = inlined_call_operand.vmem [shape: f32[16,16], index: 1, kind: input, shape index: {}]   ;;  %s4843_s2 = inlined_call_operand.hbm [shape: bf16[2,128,384], index: 2, kind: input, shape index: {}]   ;;  %s4844_s3 = inlined_call_operand.vmem [shape: f32[2,1,384], index: 3, kind: input, shape index: {}]   ;;  %s4845_s4 = inlined_call_operand.hbm [shape: bf16[2,128,128], index: 4, kind: input, shape index: {}]   ;;  %s4846_s5 = inlined_call_operand.vmem [shape: f32[2,1,128], index: 5, kind: input, shape index: {}]   ;;  %s4847_s6 = inlined_call_operand.vmem [shape: f32[2,1,128], index: 6, kind: input, shape index: {}]   ;;  %s4848_s7 = inlined_call_operand.vmem [shape: f32[2,1,128], index: 7, kind: input, shape index: {}]   ;;  %s4849_s8 = inlined_call_operand.vmem [shape: bf16[2,128,256], index: 8, kind: input, shape index: {}]   ;;  %s4850_s9 = inlined_call_operand.vmem [shape: f32[2,1,256], index: 9, kind: input, shape index: {}]   ;;  %s4851_s10 = inlined_call_operand.hbm [shape: bf16[2,256,128], index: 10, kind: input, shape index: {}]   ;;  %s4852_s11 = inlined_call_operand.vmem [shape: f32[2,1,128], index: 11, kind: input, shape index: {}]   ;;  %s4853_s12 = inlined_call_operand.vmem [shape: f32[2,1,128], index: 12, kind: input, shape index: {}]   ;;  %s4854_s13 = inlined_call_operand.vmem [shape: f32[2,1,128], index: 13, kind: input, shape index: {}]   ;;  %s4855_s14 = inlined_call_operand.vmem [shape: f32[1,128], index: 14, kind: input, shape index: {}]   ;;  %s4856_s15 = inlined_call_operand.vmem [shape: f32[1,128], index: 15, kind: input, shape index: {}]   ;;  %s4857_s16 = inlined_call_operand.hbm [shape: bf16[128,128], index: 16, kind: input, shape index: {}]   ;;  %s4858_s17 = inlined_call_operand.vmem [shape: f32[1,128], index: 17, kind: input, shape index: {}]   ;;  %s4859_s18 = inlined_call_operand.hbm [shape: f32[2,128], index: 18, kind: output, shape index: {}]  }
   0x1   :  { %4862 = sst [smem:[#allocation15_spill]] %s4841_s0 }
   0x2   :  { %4863 = sst [smem:[#allocation16_spill]] %s4842_s1 }
   0x3   :  { %4864 = sst [smem:[#allocation17_spill]] %s4843_s2 }
   0x4   :  { %23 = vsyncpa [#allocation3], 0 }
   0x5   :  { %24 = vsyncpa [#allocation6], 0 }
   0x6   :  { %25 = vsyncpa [#allocation9], 0 }
   0x7   :  { %26 = vsyncpa [#allocation4], 0  ;;  %s4184_s27 = smov [#allocation5]  }
   0x8   :  { %s50_s28 = sshll.u32 %s4184_s27, 4  ;;  %s51_s28 = int_to_ptr.vmem [resolvable:$true] %s50_s28 }
   0x9   :  { %s4084_s29 = scalar_lea.vmem %s51_s28, 2048  ;;  %p4089_p1 = scmp.lt.s32.totalorder %s51_s28, %s51_s28 }
   0xa   :  { %p4085_p0 = scmp.ne.s32.totalorder %s51_s28, %s4084_s29  ;;  %p4090_p2 = scmp.lt.s32.totalorder %s4084_s29, %s4084_s29 }
   0xc   :  { %p4091_p3 = por %p4090_p2, %p4089_p1 }
   0xe   :  { %p4092_p4 = pnand %p4091_p3, %p4085_p0 }
  0x10   :  { %4095 = shalt.err (!%p4092_p4)
}
  0x11   :  { %s4185_s30 = smov 64   ;;  %s4186_s0 = smov 4  }
  0x12   :  { %56 = dma.hbm_to_vmem [thread:$0]  %s4845_s4, 2048, %s51_s28, [#allocation6], %s4185_s30, %s4185_s30, %s4186_s0  }
  0x13   :  { %s4187_s20 = smov [#allocation2]  }
  0x14   :  { %s36_s21 = sshll.u32 %s4187_s20, 4  ;;  %s37_s21 = int_to_ptr.vmem [resolvable:$true] %s36_s21 }
  0x15   :  { %s4104_s22 = scalar_lea.vmem %s37_s21, 6144  ;;  %p4109_p6 = scmp.lt.s32.totalorder %s37_s21, %s37_s21 }
  0x16   :  { %p4105_p5 = scmp.ne.s32.totalorder %s37_s21, %s4104_s22  ;;  %p4110_p7 = scmp.lt.s32.totalorder %s4104_s22, %s4104_s22 }
  0x18   :  { %p4111_p8 = por %p4110_p7, %p4109_p6 }
  0x1a   :  { %p4112_p9 = pnand %p4111_p8, %p4105_p5 }
  0x1c   :  { %4115 = shalt.err (!%p4112_p9)
}
  0x1d   :  { %s4188_s2 = smov 192   ;;  %s4189_s23 = smov 12  }
  0x1e   :  { %s4865_s26 = sld [smem:[#allocation17_spill]]  ;;  %s4190_s27 = smov [#allocation7]  }
  0x1f   :  { %s72_s29 = sshll.u32 %s4190_s27, 4  ;;  %s4191_s19 = smov [#allocation8]   ;;  %s73_s29 = int_to_ptr.vmem [resolvable:$true] %s72_s29 }
  0x20   :  { %s94_s4 = sshll.u32 %s4191_s19, 4  ;;  %s4124_s28 = scalar_lea.vmem %s73_s29, 4096  ;;  %s95_s4 = int_to_ptr.vmem [resolvable:$true] %s94_s4 }
  0x21   :  { %p4125_p10 = scmp.ne.s32.totalorder %s73_s29, %s4124_s28  ;;  %p4129_p11 = scmp.lt.s32.totalorder %s73_s29, %s73_s29 }
  0x22   :  { %p4130_p12 = scmp.lt.s32.totalorder %s4124_s28, %s4124_s28 }
  0x24   :  { %42 = dma.hbm_to_vmem [thread:$0]  %s4865_s26, 6144, %s37_s21, [#allocation3], %s4188_s2, %s4188_s2, %s4189_s23  }
  0x25   :  { %p4131_p13 = por %p4130_p12, %p4129_p11 }
  0x27   :  { %p4132_p0 = pnand %p4131_p13, %p4125_p10 }
  0x29   :  { %4135 = shalt.err (!%p4132_p0)
}
  0x2a   :  { %78 = dma.hbm_to_vmem [thread:$0]  %s4851_s10, 4096, %s73_s29, [#allocation6], %s4185_s30, %s4185_s30, %s4186_s0  }
  0x2b   :  { %s4144_s21 = scalar_lea.vmem %s95_s4, 1024  ;;  %p4149_p2 = scmp.lt.s32.totalorder %s95_s4, %s95_s4 }
  0x2c   :  { %p4145_p1 = scmp.ne.s32.totalorder %s95_s4, %s4144_s21  ;;  %p4150_p3 = scmp.lt.s32.totalorder %s4144_s21, %s4144_s21 }
  0x2e   :  { %p4151_p4 = por %p4150_p3, %p4149_p2 }
  0x30   :  { %p4152_p5 = pnand %p4151_p4, %p4145_p1 }
  0x32   :  { %4155 = shalt.err (!%p4152_p5)
}
  0x33   :  { %100 = dma.hbm_to_vmem [thread:$0]  %s4857_s16, 1024, %s95_s4, [#allocation9], %s4185_s30, %s4185_s30, %s4186_s0  }
  0x34   :  { %4176 = dma.done.wait [#allocation3], 6144  }
  0x35   :  { %4177 = vsyncadd [#allocation3], 4294961152 }
  0x36   :  { %4178 = dma.done.wait [#allocation6], 6144  }
  0x37   :  { %4179 = vsyncadd [#allocation6], 4294961152 }
  0x38   :  { %4180 = dma.done.wait [#allocation9], 1024  }
  0x39   :  { %4181 = vsyncadd [#allocation9], 4294966272  ;;  %s4866_s24 = sld [smem:[#allocation15_spill]]  ;;  %v3806_v2 = vld [vmem:[#allocation2 + $0xac] ss:$12 sps:$4 sm:$0xff]   ;;  %v4192_v4 = vmov 0.0   ;;  %v196_v53 = vlaneseq }
  0x3a   :  { %v3808_v3 = vld [vmem:[#allocation2 + $0xa8] ss:$12 sps:$4 sm:$0xff]   ;;  %3572 = vmatprep.subr.bf16.mxu1 %v4192_v4  ;;  %v3809_v5 = vld [vmem:[#allocation2 + $0xb0] ss:$12 sps:$4 sm:$0xff]   ;;  %339 = vmatprep.subr.bf16.mxu0 %v3806_v2  ;;  %v3813_v16 = vld [vmem:[#allocation2 + $0x98] ss:$12 sps:$4 sm:$0xff]  }
  0x3b   :  { %340 = vmatpush1.bf16.msra.mxu0 %v3808_v3  ;;  %3573 = vmatpush3.bf16.msra.mxu1 %v3809_v5  ;;  %v3810_v14 = vld [vmem:[#allocation2 + $0x94] ss:$12 sps:$4 sm:$0xff]   ;;  %v3812_v15 = vld [vmem:[#allocation2 + $0x90] ss:$12 sps:$4 sm:$0xff]   ;;  %v3816_v18 = vld [vmem:[#allocation2 + $0x78] ss:$12 sps:$4 sm:$0xff]  }
  0x3c   :  { %3574 = vmatprep.subr.bf16.mxu1 %v4192_v4  ;;  %341 = vmatprep.subr.bf16.mxu0 %v3810_v14  ;;  %v3814_v17 = vld [vmem:[#allocation2 + $0x7c] ss:$12 sps:$4 sm:$0xff]   ;;  %v3817_v19 = vld [vmem:[#allocation2 + $0x80] ss:$12 sps:$4 sm:$0xff]   ;;  %v3818_v20 = vld [vmem:[#allocation2 + $0x64] ss:$12 sps:$4 sm:$0xff]  }
  0x3d   :  { %v3820_v21 = vld [vmem:[#allocation2 + $0x60] ss:$12 sps:$4 sm:$0xff]   ;;  %v3821_v22 = vld [vmem:[#allocation2 + $0x68] ss:$12 sps:$4 sm:$0xff]   ;;  %v3825_v25 = vld [vmem:[#allocation2 + $0x50] ss:$12 sps:$4 sm:$0xff]  }
  0x3e   :  { %v3822_v23 = vld [vmem:[#allocation2 + $0x4c] ss:$12 sps:$4 sm:$0xff]   ;;  %v3824_v24 = vld [vmem:[#allocation2 + $0x48] ss:$12 sps:$4 sm:$0xff]   ;;  %v4193_v27 = vmov 0   ;;  %vm4194_vm0 = vmmov 0  }
  0x3f   :  { %v116_v0 = vld [vmem:[%s4866_s24] sm:$0xff]  ;;  %v117_v1 = vld [vmem:[%s4866_s24 + $0x8] sm:$0xff]  ;;  %342 = vmatpush1.bf16.msra.mxu0 %v3812_v15  ;;  %3575 = vmatpush3.bf16.msra.mxu1 %v3813_v16  ;;  %v3828_v28 = vld [vmem:[#allocation2 + $0x30] ss:$12 sps:$4 sm:$0xff]   ;;  %v4359_v54 = vshrl.u32 %v196_v53, 7  ;;  %vm441_vm1 = vcmask 261120  }
  0x40   :  { %120 = vadd.xlane.f32.xlu0 %v116_v0  ;;  %3576 = vmatprep.subr.bf16.mxu1 %v4192_v4  ;;  %v3826_v26 = vld [vmem:[#allocation2 + $0x34] ss:$12 sps:$4 sm:$0xff]   ;;  %v3829_v29 = vld [vmem:[#allocation2 + $0x38] ss:$12 sps:$4 sm:$0xff]   ;;  %v3830_v30 = vld [vmem:[#allocation2 + $0x1c] ss:$12 sps:$4 sm:$0xff]  }
  0x41   :  { %343 = vmatprep.subr.bf16.mxu0 %v3814_v17  ;;  %371 = vmatprep.mubr.bf16.mxu0 %v4193_v27  ;;  %v3832_v31 = vld [vmem:[#allocation2 + $0x18] ss:$12 sps:$4 sm:$0xff]   ;;  %v3833_v32 = vld [vmem:[#allocation2 + $0x20] ss:$12 sps:$4 sm:$0xff]   ;;  %v3837_v35 = vld [vmem:[#allocation2 + $0x8] ss:$12 sps:$4 sm:$0xff]  }
  0x42   :  { %3588 = vmatprep.mubr.msk.bf16.mxu1 %vm4194_vm0, %v4192_v4  ;;  %v3834_v33 = vld [vmem:[#allocation2 + $0x4] ss:$12 sps:$4 sm:$0xff]   ;;  %v3836_v34 = vld [vmem:[#allocation2] ss:$12 sps:$4 sm:$0xff]   ;;  %v4362_v55 = vsub.s32 1, %v4359_v54  ;;  %v4369_v2 = vsub.s32 0, %v4359_v54 }
  0x43   :  { %344 = vmatpush1.bf16.msra.mxu0 %v3816_v18  ;;  %3577 = vmatpush3.bf16.msra.mxu1 %v3817_v19  ;;  %v3246_v44 = vld [vmem:[%s4855_s14] ss:$0 sm:$0xff]  ;;  %s4867_s28 = sld [smem:[#allocation16_spill]]  ;;  %vm493_vm2 = vcmask 130048   ;;  %s4195_s21 = smov 96   ;;  %vm3114_vm3 = vcmask 1040384  }
  0x44   :  { %122 = vadd.xlane.f32.xlu0 %v117_v1  ;;  %3578 = vmatprep.subr.bf16.mxu1 %v4192_v4  ;;  %v3247_v48 = vld [vmem:[%s4856_s15] ss:$0 sm:$0xff]  ;;  %s4196_s22 = smov 32  }
  0x45   :  { %345 = vmatprep.subr.bf16.mxu0 %v3818_v20  ;;  %v194_v58 = vld [vmem:[%s4844_s3] sm:$0x7] }
  0x46   :  { %v203_v61 = vrot.slane %v194_v58, %v4362_v55 }
  0x47   :  { %346 = vmatpush1.bf16.msra.mxu0 %v3820_v21  ;;  %3579 = vmatpush3.bf16.msra.mxu1 %v3821_v22 }
  0x48   :  { %347 = vmatprep.subr.bf16.mxu0 %v3822_v23  ;;  %3580 = vmatprep.subr.bf16.mxu1 %v4192_v4 }
  0x49   :  { %v4393_v18 = vld [vmem:[%s4867_s28] sm:$0xff]  ;;  %v4399_v23 = vld [vmem:[%s4867_s28 + $0x8] sm:$0xff] }
  0x4b   :  { %348 = vmatpush1.bf16.msra.mxu0 %v3824_v24  ;;  %3581 = vmatpush3.bf16.msra.mxu1 %v3825_v25 }
  0x4c   :  { %349 = vmatprep.subr.bf16.mxu0 %v3826_v26  ;;  %3582 = vmatprep.subr.bf16.mxu1 %v4192_v4 }
  0x4f   :  { %350 = vmatpush1.bf16.msra.mxu0 %v3828_v28  ;;  %3583 = vmatpush3.bf16.msra.mxu1 %v3829_v29 }
  0x50   :  { %351 = vmatprep.subr.bf16.mxu0 %v3830_v30  ;;  %3584 = vmatprep.subr.bf16.mxu1 %v4192_v4 }
  0x53   :  { %352 = vmatpush1.bf16.msra.mxu0 %v3832_v31  ;;  %3585 = vmatpush3.bf16.msra.mxu1 %v3833_v32 }
  0x54   :  { %353 = vmatprep.subr.bf16.mxu0 %v3834_v33  ;;  %3586 = vmatprep.subr.bf16.mxu1 %v4192_v4 }
  0x57   :  { %354 = vmatpush1.bf16.msra.mxu0 %v3836_v34  ;;  %3587 = vmatpush3.bf16.msra.mxu1 %v3837_v35 }
  0x58   :  { %3592 = vmatprep.subr.bf16.mxu1 %v4192_v4  ;;  %3616 = vmatprep.subr.bf16.mxu0 %v4192_v4 }
  0xc9   :  { %v121_v6 = vpop.xlane.xlu0 %120 }
  0xca   :  { %v125_v7 = vmul.f32 0.0078125, %v121_v6  ;;  %v206_v6 = vsub.s32 2, %v4359_v54 }
  0xcc   :  { %v4322_v8 = vsub.f32 %v116_v0, %v125_v7 }
  0xcd   :  { %v123_v9 = vpop.xlane.xlu0 %122 }
  0xce   :  { %v126_v10 = vmul.f32 0.0078125, %v123_v9  ;;  %v129_v11 = vmul.f32 %v4322_v8, %v4322_v8 }
  0xd0   :  { %v4326_v12 = vsub.f32 %v117_v1, %v126_v10  ;;  %131 = vadd.xlane.f32.xlu1 %v129_v11  ;;  %v207_v10 = vrot.slane %v194_v58, %v206_v6 }
  0xd2   :  { %v130_v13 = vmul.f32 %v4326_v12, %v4326_v12 }
  0xd4   :  { %133 = vadd.xlane.f32.xlu1 %v130_v13 }
 0x159   :  { %v132_v36 = vpop.xlane.xlu1 %131 }
 0x15a   :  { %v135_v37 = vmul.f32 0.0078125, %v132_v36 }
 0x15c   :  { %v137_v38 = vadd.f32 1e-12, %v135_v37 }
 0x15d   :  { %v134_v39 = vpop.xlane.xlu1 %133 }
 0x15e   :  { %3974 = vrsqrt.f32 %v137_v38  ;;  %v136_v40 = vmul.f32 0.0078125, %v134_v39 }
 0x160   :  { %v138_v41 = vadd.f32 1e-12, %v136_v40 }
 0x162   :  { %3976 = vrsqrt.f32 %v138_v41 }
 0x16b   :  { %v3975_v42 = vpop.eup %3974 }
 0x16c   :  { %v141_v43 = vmul.f32 %v3975_v42, %v4322_v8  ;;  %v199_v8 = vrot.slane %v194_v58, %v4369_v2 }
 0x16e   :  { %v149_v47 = vmul.f32 %v3246_v44, %v141_v43 }
 0x16f   :  { %v3977_v45 = vpop.eup %3976 }
 0x170   :  { %v142_v46 = vmul.f32 %v3977_v45, %v4326_v12  ;;  %v4349_v50 = vadd.f32 %v3247_v48, %v149_v47 }
 0x172   :  { %v150_v49 = vmul.f32 %v3246_v44, %v142_v46 }
 0x174   :  { %v4351_v51 = vadd.f32 %v3247_v48, %v150_v49 }
 0x176   :  { %v193_v52 = vpack.c.bf16 %v4351_v51, %v4349_v50 }
 0x178   :  { %372 = vmatmul.mubr.bf16.vlgmr.msra.gmra.mxu0 %v193_v52  ;;  %3589 = vmatmul.mubr.bf16.vlgmr.msra.gmra.mxu1 %v193_v52 }
 0x179   :  { %3594 = vmatprep.mubr.msk.bf16.mxu1 %vm4194_vm0, %v4192_v4  ;;  %3620 = vmatprep.mubr.msk.bf16.mxu0 %vm4194_vm0, %v4192_v4 }
 0x238   :  { %v373_v56 = vpop.f32.mrf.mxu0  ;;  %v416_v57 = vpop.f32.mrf.mxu1 }
 0x239   :  { %v374_v13 = vadd.f32 %v373_v56, %v199_v8  ;;  %v417_v14 = vadd.f32 %v416_v57, %v207_v10 }
 0x23a   :  { %v375_v59 = vpop.f32.mrf.mxu0  ;;  %v3590_v60 = vpop.f32.mrf.mxu1 }
 0x23b   :  { %v376_v3 = vadd.f32 %v375_v59, %v203_v61 }
 0x23c   :  { %v377_v62 = vpop.f32.mrf.mxu0  ;;  %v419_v63 = vpop.f32.mrf.mxu1 }
 0x23d   :  { %v378_v11 = vadd.f32 %v377_v62, %v199_v8  ;;  %v420_v12 = vadd.f32 %v419_v63, %v207_v10 }
 0x23e   :  { %v379_v0 = vpop.f32.mrf.mxu0  ;;  %v3591_v1 = vpop.f32.mrf.mxu1 }
 0x23f   :  { %v380_v5 = vadd.f32 %v379_v0, %v203_v61  ;;  %v4380_v15 = vpack.c.bf16 %v378_v11, %v374_v13  ;;  %v4382_v16 = vpack.c.bf16 %v420_v12, %v417_v14 }
 0x241   :  { %v4372_v7 = vpack.c.bf16 %v380_v5, %v376_v3 }
 0x243   :  { %v446_v9 = vsel %vm441_vm1, %v4372_v7, 0 }
 0x244   :  { %3593 = vmatpush3.bf16.xpose.msra.mxu1 %v446_v9 }
 0x245   :  { %3598 = vmatprep.subr.bf16.mxu1 %v4192_v4 }
 0x24b   :  { %3595 = vmatmul.mubr.msk.bf16.vlgmr.msra.gmra.mxu1 %vm441_vm1, %v4380_v15 }
 0x24c   :  { %3599 = vmatpush3.bf16.msra.mxu1 %v4382_v16  ;;  %3600 = vmatprep.mubr.msk.bf16.mxu1 %vm4194_vm0, %v4192_v4 }
 0x24d   :  { %3604 = vmatprep.subr.bf16.mxu1 %v4192_v4 }
 0x30b   :  { %v482_v17 = vpop.f32.mrf.mxu1 }
 0x30c   :  { %v489_v19 = vmul.f32 0.17677669, %v482_v17 }
 0x30d   :  { %v3596_v20 = vpop.f32.mrf.mxu1 }
 0x30e   :  { %v491_v21 = vadd.f32 %v489_v19, %v4393_v18 }
 0x30f   :  { %v485_v22 = vpop.f32.mrf.mxu1 }
 0x310   :  { %v490_v24 = vmul.f32 0.17677669, %v485_v22  ;;  %v494_v25 = vsel %vm493_vm2, %v491_v21, -inf  ;;  %v3840_v22 = vld [vmem:[#allocation5 + $0x18] sm:$0xff]  }
 0x311   :  { %495 = vmax.xlane.f32.xlu0 %v494_v25  ;;  %v3597_v26 = vpop.f32.mrf.mxu1  ;;  %3617 = vmatpush3.bf16.msra.mxu0 %v3840_v22 }
 0x312   :  { %v492_v28 = vadd.f32 %v490_v24, %v4399_v23  ;;  %3618 = vmatprep.subr.bf16.mxu0 %v4192_v4 }
 0x314   :  { %v497_v29 = vsel %vm493_vm2, %v492_v28, -inf }
 0x315   :  { %498 = vmax.xlane.f32.xlu1 %v497_v29 }
 0x39a   :  { %v496_v30 = vpop.xlane.xlu0 %495 }
 0x39b   :  { %v500_v31 = vsub.f32 %v491_v21, %v496_v30 }
 0x39d   :  { %v502_v32 = vmul.f32 1.442695, %v500_v31 }
 0x39e   :  { %v499_v33 = vpop.xlane.xlu1 %498 }
 0x39f   :  { %3978 = vpow2.f32 %v502_v32  ;;  %v501_v34 = vsub.f32 %v492_v28, %v499_v33  ;;  %v3838_v32 = vld [vmem:[#allocation5 + $0x8] sm:$0xff]  }
 0x3a1   :  { %v504_v35 = vmul.f32 1.442695, %v501_v34  ;;  %v3839_v34 = vld [vmem:[#allocation5] sm:$0xff]  }
 0x3a3   :  { %3980 = vpow2.f32 %v504_v35  ;;  %v3841_v35 = vld [vmem:[#allocation5 + $0x10] sm:$0xff]  }
 0x3a4   :  { %3619 = vmatpush3.bf16.msra.mxu0 %v3841_v35 }
 0x3a5   :  { %3632 = vmatprep.subr.bf16.mxu0 %v4192_v4 }
 0x3ac   :  { %v3979_v36 = vpop.eup %3978 }
 0x3ad   :  { %v506_v37 = vsel %vm493_vm2, %v3979_v36, 0.0 }
 0x3ae   :  { %507 = vadd.xlane.f32.xlu0 %v506_v37 }
 0x3b0   :  { %v3981_v38 = vpop.eup %3980 }
 0x3b1   :  { %v509_v39 = vsel %vm493_vm2, %v3981_v38, 0.0 }
 0x3b2   :  { %510 = vadd.xlane.f32.xlu1 %v509_v39 }
 0x3c3   :  { %564 = vrot.lane.b32.xlu1 %v4380_v15, %s4195_s21 }
 0x3c4   :  { %567 = vrot.lane.b32.xlu0 %v4372_v7, %s4195_s21 }
 0x437   :  { %v508_v40 = vpop.xlane.xlu0 %507 }
 0x438   :  { %3982 = vrcp.f32 %v508_v40 }
 0x43b   :  { %v511_v41 = vpop.xlane.xlu1 %510  ;;  %v568_v46 = vpop.permute.xlu0 %567 }
 0x43c   :  { %3984 = vrcp.f32 %v511_v41  ;;  %v573_v48 = vsel %vm441_vm1, %v568_v46, 0 }
 0x43f   :  { %v565_v49 = vpop.permute.xlu1 %564 }
 0x445   :  { %v3983_v42 = vpop.eup %3982 }
 0x446   :  { %v514_v44 = vmul.f32 %v3983_v42, %v3979_v36 }
 0x449   :  { %v3985_v43 = vpop.eup %3984 }
 0x44a   :  { %v515_v45 = vmul.f32 %v3985_v43, %v3981_v38 }
 0x44c   :  { %v516_v47 = vpack.c.bf16 %v515_v45, %v514_v44 }
 0x44e   :  { %3601 = vmatmul.mubr.msk.bf16.vlgmr.msra.gmra.mxu1 %vm493_vm2, %v516_v47 }
 0x44f   :  { %3605 = vmatpush3.bf16.xpose.msra.mxu1 %v573_v48  ;;  %3606 = vmatprep.mubr.msk.bf16.mxu1 %vm4194_vm0, %v4192_v4 }
 0x450   :  { %3610 = vmatprep.subr.bf16.mxu1 %v4192_v4 }
 0x456   :  { %3607 = vmatmul.mubr.msk.bf16.vlgmr.msra.gmra.mxu1 %vm441_vm1, %v565_v49 }
 0x457   :  { %3612 = vmatprep.mubr.msk.bf16.mxu1 %vm4194_vm0, %v4192_v4 }
 0x50e   :  { %v555_v52 = vpop.f32.mrf.mxu1 }
 0x510   :  { %v3602_v53 = vpop.f32.mrf.mxu1 }
 0x512   :  { %v558_v56 = vpop.f32.mrf.mxu1 }
 0x513   :  { %v562_v57 = vpack.c.bf16 %v558_v56, %v555_v52 }
 0x514   :  { %v3603_v58 = vpop.f32.mrf.mxu1 }
 0x516   :  { %v609_v59 = vpop.f32.mrf.mxu1 }
 0x517   :  { %v616_v60 = vmul.f32 0.17677669, %v609_v59 }
 0x518   :  { %v3608_v61 = vpop.f32.mrf.mxu1 }
 0x519   :  { %v618_v62 = vadd.f32 %v616_v60, %v4393_v18 }
 0x51a   :  { %v612_v63 = vpop.f32.mrf.mxu1 }
 0x51b   :  { %v617_v0 = vmul.f32 0.17677669, %v612_v63  ;;  %v620_v1 = vsel %vm493_vm2, %v618_v62, -inf }
 0x51c   :  { %621 = vmax.xlane.f32.xlu1 %v620_v1  ;;  %v3609_v3 = vpop.f32.mrf.mxu1 }
 0x51d   :  { %v619_v5 = vadd.f32 %v617_v0, %v4399_v23 }
 0x51f   :  { %v623_v8 = vsel %vm493_vm2, %v619_v5, -inf }
 0x520   :  { %624 = vmax.xlane.f32.xlu0 %v623_v8 }
 0x5a5   :  { %v622_v9 = vpop.xlane.xlu1 %621 }
 0x5a6   :  { %v626_v10 = vsub.f32 %v618_v62, %v622_v9 }
 0x5a8   :  { %v628_v11 = vmul.f32 1.442695, %v626_v10 }
 0x5a9   :  { %v625_v12 = vpop.xlane.xlu0 %624 }
 0x5aa   :  { %3986 = vpow2.f32 %v628_v11  ;;  %v627_v13 = vsub.f32 %v619_v5, %v625_v12 }
 0x5ac   :  { %v630_v14 = vmul.f32 1.442695, %v627_v13 }
 0x5ae   :  { %3988 = vpow2.f32 %v630_v14 }
 0x5b7   :  { %v3987_v17 = vpop.eup %3986 }
 0x5b8   :  { %v632_v19 = vsel %vm493_vm2, %v3987_v17, 0.0 }
 0x5b9   :  { %633 = vadd.xlane.f32.xlu0 %v632_v19 }
 0x5bb   :  { %v3989_v20 = vpop.eup %3988 }
 0x5bc   :  { %v635_v21 = vsel %vm493_vm2, %v3989_v20, 0.0 }
 0x5bd   :  { %636 = vadd.xlane.f32.xlu1 %v635_v21 }
 0x5ce   :  { %806 = vrot.lane.b32.xlu1 %v4372_v7, %s4185_s30 }
 0x5cf   :  { %644 = vrot.lane.b32.xlu0 %v4382_v16, %s4195_s21 }
 0x5d2   :  { %804 = vrot.lane.b32.xlu1 %v4380_v15, %s4185_s30 }
 0x642   :  { %v634_v24 = vpop.xlane.xlu0 %633 }
 0x643   :  { %3990 = vrcp.f32 %v634_v24 }
 0x646   :  { %v637_v25 = vpop.xlane.xlu1 %636  ;;  %v645_v26 = vpop.permute.xlu0 %644 }
 0x647   :  { %3992 = vrcp.f32 %v637_v25  ;;  %3611 = vmatpush3.bf16.msra.mxu1 %v645_v26 }
 0x648   :  { %3624 = vmatprep.subr.bf16.mxu1 %v4192_v4 }
 0x64a   :  { %v807_v38 = vpop.permute.xlu1 %806 }
 0x64b   :  { %v812_v42 = vsel %vm441_vm1, %v807_v38, 0 }
 0x64e   :  { %v805_v46 = vpop.permute.xlu1 %804 }
 0x650   :  { %v3991_v28 = vpop.eup %3990 }
 0x651   :  { %v640_v30 = vmul.f32 %v3991_v28, %v3987_v17 }
 0x654   :  { %v3993_v29 = vpop.eup %3992 }
 0x655   :  { %v641_v31 = vmul.f32 %v3993_v29, %v3989_v20 }
 0x657   :  { %v642_v33 = vpack.c.bf16 %v641_v31, %v640_v30  ;;  %v3842_v30 = vld [vmem:[#allocation5 + $0x28] sm:$0xff]   ;;  %v3843_v31 = vld [vmem:[#allocation5 + $0x20] sm:$0xff]  }
 0x659   :  { %3613 = vmatmul.mubr.msk.bf16.vlgmr.msra.gmra.mxu1 %vm493_vm2, %v642_v33 }
 0x65a   :  { %3625 = vmatpush3.bf16.msra.mxu1 %v3838_v32  ;;  %3628 = vmatprep.mubr.msk.bf16.mxu1 %vm4194_vm0, %v4192_v4 }
 0x65b   :  { %3626 = vmatprep.subr.bf16.mxu1 %v4192_v4 }
 0x65e   :  { %3627 = vmatpush3.bf16.msra.mxu1 %v3839_v34 }
 0x65f   :  { %3638 = vmatprep.subr.bf16.mxu1 %v4192_v4 }
 0x661   :  { %3629 = vmatmul.mubr.msk.bf16.vlgmr.msra.gmra.mxu1 %vm441_vm1, %v562_v57 }
 0x662   :  { %3640 = vmatprep.mubr.msk.bf16.mxu1 %vm4194_vm0, %v4192_v4 }
 0x719   :  { %v684_v36 = vpop.f32.mrf.mxu1 }
 0x71b   :  { %v3614_v37 = vpop.f32.mrf.mxu1 }
 0x71d   :  { %v687_v39 = vpop.f32.mrf.mxu1 }
 0x71e   :  { %v691_v40 = vpack.c.bf16 %v687_v39, %v684_v36 }
 0x71f   :  { %v3615_v41 = vpop.f32.mrf.mxu1 }
 0x720   :  { %3621 = vmatmul.mubr.msk.bf16.vlgmr.msra.gmra.mxu0 %vm441_vm1, %v691_v40 }
 0x721   :  { %3633 = vmatpush3.bf16.xpose.msra.mxu0 %v812_v42  ;;  %v4443_v43 = vpop.f32.mrf.mxu1  ;;  %3634 = vmatprep.mubr.msk.bf16.mxu0 %vm4194_vm0, %v4192_v4 }
 0x722   :  { %3644 = vmatprep.subr.bf16.mxu0 %v4192_v4 }
 0x723   :  { %v3630_v44 = vpop.f32.mrf.mxu1 }
 0x725   :  { %v4448_v45 = vpop.f32.mrf.mxu1 }
 0x727   :  { %v3631_v47 = vpop.f32.mrf.mxu1 }
 0x728   :  { %3635 = vmatmul.mubr.msk.bf16.vlgmr.msra.gmra.mxu0 %vm441_vm1, %v805_v46 }
 0x729   :  { %3648 = vmatprep.mubr.msk.bf16.mxu0 %vm4194_vm0, %v4192_v4  ;;  %3645 = vmatpush3.bf16.msra.mxu0 %v3842_v30 }
 0x72a   :  { %3646 = vmatprep.subr.bf16.mxu0 %v4192_v4 }
 0x72d   :  { %3647 = vmatpush3.bf16.msra.mxu0 %v3843_v31 }
 0x72e   :  { %3658 = vmatprep.subr.bf16.mxu0 %v4192_v4 }
 0x7e0   :  { %v4453_v48 = vpop.f32.mrf.mxu0 }
 0x7e2   :  { %v3622_v49 = vpop.f32.mrf.mxu0 }
 0x7e4   :  { %v4455_v52 = vpop.f32.mrf.mxu0 }
 0x7e6   :  { %v3623_v53 = vpop.f32.mrf.mxu0 }
 0x7e8   :  { %v848_v56 = vpop.f32.mrf.mxu0 }
 0x7e9   :  { %v855_v57 = vmul.f32 0.17677669, %v848_v56 }
 0x7ea   :  { %v3636_v58 = vpop.f32.mrf.mxu0 }
 0x7eb   :  { %v857_v59 = vadd.f32 %v855_v57, %v4393_v18 }
 0x7ec   :  { %v851_v60 = vpop.f32.mrf.mxu0 }
 0x7ed   :  { %v856_v61 = vmul.f32 0.17677669, %v851_v60  ;;  %v859_v62 = vsel %vm493_vm2, %v857_v59, -inf }
 0x7ee   :  { %860 = vmax.xlane.f32.xlu1 %v859_v62  ;;  %v3637_v63 = vpop.f32.mrf.mxu0 }
 0x7ef   :  { %v858_v0 = vadd.f32 %v856_v61, %v4399_v23 }
 0x7f1   :  { %v862_v1 = vsel %vm493_vm2, %v858_v0, -inf }
 0x7f2   :  { %863 = vmax.xlane.f32.xlu0 %v862_v1 }
 0x7ff   :  { %882 = vrot.lane.b32.xlu1 %v4382_v16, %s4185_s30 }
 0x803   :  { %988 = vrot.lane.b32.xlu1 %v4380_v15, %s4196_s22 }
 0x877   :  { %v861_v3 = vpop.xlane.xlu1 %860 }
 0x878   :  { %v865_v5 = vsub.f32 %v857_v59, %v861_v3 }
 0x87a   :  { %v867_v8 = vmul.f32 1.442695, %v865_v5  ;;  %v801_v5 = vadd.f32 %v4448_v45, %v4455_v52  ;;  %v3845_v45 = vld [vmem:[#allocation5 + $0x30] sm:$0xff]  }
 0x87b   :  { %v883_v9 = vpop.permute.xlu1 %882  ;;  %v864_v10 = vpop.xlane.xlu0 %863 }
 0x87c   :  { %3994 = vpow2.f32 %v867_v8  ;;  %v866_v11 = vsub.f32 %v858_v0, %v864_v10  ;;  %3639 = vmatpush3.bf16.msra.mxu1 %v883_v9 }
 0x87d   :  { %3652 = vmatprep.subr.bf16.mxu1 %v4192_v4 }
 0x87e   :  { %v869_v12 = vmul.f32 1.442695, %v866_v11 }
 0x880   :  { %3996 = vpow2.f32 %v869_v12 }
 0x889   :  { %v3995_v13 = vpop.eup %3994 }
 0x88a   :  { %v871_v14 = vsel %vm493_vm2, %v3995_v13, 0.0 }
 0x88b   :  { %872 = vadd.xlane.f32.xlu0 %v871_v14 }
 0x88d   :  { %v3997_v17 = vpop.eup %3996 }
 0x88e   :  { %v874_v19 = vsel %vm493_vm2, %v3997_v17, 0.0 }
 0x88f   :  { %875 = vadd.xlane.f32.xlu0 %v874_v19 }
 0x8a5   :  { %990 = vrot.lane.b32.xlu0 %v4372_v7, %s4196_s22  ;;  %v989_v7 = vpop.permute.xlu1 %988 }
 0x914   :  { %v873_v15 = vpop.xlane.xlu0 %872 }
 0x915   :  { %3998 = vrcp.f32 %v873_v15 }
 0x918   :  { %v876_v20 = vpop.xlane.xlu0 %875 }
 0x919   :  { %4000 = vrcp.f32 %v876_v20 }
 0x91c   :  { %v991_v26 = vpop.permute.xlu0 %990 }
 0x91d   :  { %v996_v29 = vsel %vm441_vm1, %v991_v26, 0 }
 0x922   :  { %v3999_v21 = vpop.eup %3998 }
 0x923   :  { %v879_v24 = vmul.f32 %v3999_v21, %v3995_v13 }
 0x926   :  { %v4001_v22 = vpop.eup %4000 }
 0x927   :  { %v880_v25 = vmul.f32 %v4001_v22, %v3997_v17 }
 0x929   :  { %v881_v28 = vpack.c.bf16 %v880_v25, %v879_v24  ;;  %v3292_v25 = vld [vmem:[%s4846_s5] ss:$0 sm:$0xff] }
 0x92b   :  { %3641 = vmatmul.mubr.msk.bf16.vlgmr.msra.gmra.mxu1 %vm493_vm2, %v881_v28 }
 0x92c   :  { %3653 = vmatpush3.bf16.xpose.msra.mxu1 %v996_v29  ;;  %3654 = vmatprep.mubr.msk.bf16.mxu1 %vm4194_vm0, %v4192_v4 }
 0x92d   :  { %3664 = vmatprep.subr.bf16.mxu1 %v4192_v4 }
 0x933   :  { %3655 = vmatmul.mubr.msk.bf16.vlgmr.msra.gmra.mxu1 %vm441_vm1, %v989_v7 }
 0x934   :  { %3668 = vmatprep.mubr.msk.bf16.mxu1 %vm4194_vm0, %v4192_v4 }
 0x9eb   :  { %v922_v32 = vpop.f32.mrf.mxu1 }
 0x9ed   :  { %v3642_v33 = vpop.f32.mrf.mxu1 }
 0x9ef   :  { %v925_v34 = vpop.f32.mrf.mxu1 }
 0x9f0   :  { %v929_v35 = vpack.c.bf16 %v925_v34, %v922_v32 }
 0x9f1   :  { %v3643_v36 = vpop.f32.mrf.mxu1 }
 0x9f2   :  { %3649 = vmatmul.mubr.msk.bf16.vlgmr.msra.gmra.mxu0 %vm441_vm1, %v929_v35  ;;  %v3846_v35 = vld [vmem:[%s4849_s8 + $0x70] ss:$8 sps:$4 sm:$0xff]   ;;  %v3848_v36 = vld [vmem:[%s4849_s8 + $0x74] ss:$8 sps:$4 sm:$0xff]  }
 0x9f3   :  { %v1032_v37 = vpop.f32.mrf.mxu1  ;;  %3660 = vmatprep.mubr.msk.bf16.mxu0 %vm4194_vm0, %v4192_v4 }
 0x9f4   :  { %v1039_v38 = vmul.f32 0.17677669, %v1032_v37 }
 0x9f5   :  { %v3656_v39 = vpop.f32.mrf.mxu1 }
 0x9f6   :  { %v1041_v40 = vadd.f32 %v1039_v38, %v4393_v18 }
 0x9f7   :  { %v1035_v41 = vpop.f32.mrf.mxu1 }
 0x9f8   :  { %v1040_v42 = vmul.f32 0.17677669, %v1035_v41  ;;  %v1043_v44 = vsel %vm493_vm2, %v1041_v40, -inf }
 0x9f9   :  { %1044 = vmax.xlane.f32.xlu1 %v1043_v44  ;;  %v3657_v46 = vpop.f32.mrf.mxu1  ;;  %v3851_v44 = vld [vmem:[%s4849_s8 + $0x64] ss:$8 sps:$4 sm:$0xff]  }
 0x9fa   :  { %v1042_v47 = vadd.f32 %v1040_v42, %v4399_v23  ;;  %v798_v23 = vadd.f32 %v4443_v43, %v4453_v48  ;;  %v3844_v48 = vld [vmem:[#allocation5 + $0x38] sm:$0xff]   ;;  %v3849_v46 = vld [vmem:[%s4849_s8 + $0x60] ss:$8 sps:$4 sm:$0xff]  }
 0x9fb   :  { %3665 = vmatpush3.bf16.msra.mxu1 %v3844_v48 }
 0x9fc   :  { %v1046_v49 = vsel %vm493_vm2, %v1042_v47, -inf  ;;  %3666 = vmatprep.subr.bf16.mxu1 %v4192_v4 }
 0x9fd   :  { %1047 = vmax.xlane.f32.xlu0 %v1046_v49  ;;  %v3852_v49 = vld [vmem:[%s4849_s8 + $0x50] ss:$8 sps:$4 sm:$0xff]  }
 0x9ff   :  { %3667 = vmatpush3.bf16.msra.mxu1 %v3845_v45  ;;  %v3870_v45 = vld [vmem:[#allocation7 + $0x78] sm:$0xff]  }
 0xa00   :  { %3482 = vmatprep.subr.bf16.mxu1 %v3870_v45 }
 0xa82   :  { %v1045_v53 = vpop.xlane.xlu1 %1044 }
 0xa83   :  { %v1049_v56 = vsub.f32 %v1041_v40, %v1045_v53  ;;  %v3855_v53 = vld [vmem:[%s4849_s8 + $0x40] ss:$8 sps:$4 sm:$0xff]  }
 0xa85   :  { %v1051_v57 = vmul.f32 1.442695, %v1049_v56  ;;  %v3857_v56 = vld [vmem:[%s4849_s8 + $0x44] ss:$8 sps:$4 sm:$0xff]  }
 0xa86   :  { %v1048_v58 = vpop.xlane.xlu0 %1047 }
 0xa87   :  { %4002 = vpow2.f32 %v1051_v57  ;;  %v1050_v59 = vsub.f32 %v1042_v47, %v1048_v58  ;;  %v3854_v47 = vld [vmem:[%s4849_s8 + $0x54] ss:$8 sps:$4 sm:$0xff]   ;;  %v3858_v58 = vld [vmem:[%s4849_s8 + $0x30] ss:$8 sps:$4 sm:$0xff]  }
 0xa88   :  { %v3860_v57 = vld [vmem:[%s4849_s8 + $0x34] ss:$8 sps:$4 sm:$0xff]  }
 0xa89   :  { %v1053_v60 = vmul.f32 1.442695, %v1050_v59  ;;  %v3863_v59 = vld [vmem:[%s4849_s8 + $0x24] ss:$8 sps:$4 sm:$0xff]  }
 0xa8b   :  { %4004 = vpow2.f32 %v1053_v60  ;;  %v3861_v60 = vld [vmem:[%s4849_s8 + $0x20] ss:$8 sps:$4 sm:$0xff]  }
 0xa94   :  { %v4003_v18 = vpop.eup %4002 }
 0xa95   :  { %v1055_v61 = vsel %vm493_vm2, %v4003_v18, 0.0 }
 0xa96   :  { %1056 = vadd.xlane.f32.xlu0 %v1055_v61  ;;  %v3864_v61 = vld [vmem:[%s4849_s8 + $0x10] ss:$8 sps:$4 sm:$0xff]  }
 0xa98   :  { %v4005_v62 = vpop.eup %4004 }
 0xa99   :  { %v1058_v63 = vsel %vm493_vm2, %v4005_v62, 0.0 }
 0xa9a   :  { %1059 = vadd.xlane.f32.xlu1 %v1058_v63  ;;  %v3867_v63 = vld [vmem:[%s4849_s8] ss:$8 sps:$4 sm:$0xff]  }
 0xaac   :  { %1066 = vrot.lane.b32.xlu0 %v4382_v16, %s4196_s22 }
 0xab2   :  { %v979_v0 = vpop.f32.mrf.mxu0 }
 0xab3   :  { %v986_v1 = vadd.f32 %v979_v0, %v798_v23 }
 0xab4   :  { %v3650_v3 = vpop.f32.mrf.mxu0 }
 0xab6   :  { %v982_v8 = vpop.f32.mrf.mxu0 }
 0xab7   :  { %v987_v9 = vadd.f32 %v982_v8, %v801_v5 }
 0xab8   :  { %v3651_v10 = vpop.f32.mrf.mxu0 }
 0xb1f   :  { %v1057_v11 = vpop.xlane.xlu0 %1056 }
 0xb20   :  { %4006 = vrcp.f32 %v1057_v11  ;;  %v3293_v11 = vld [vmem:[%s4847_s6] ss:$0 sm:$0xff] }
 0xb23   :  { %v1060_v12 = vpop.xlane.xlu1 %1059  ;;  %v1067_v13 = vpop.permute.xlu0 %1066 }
 0xb24   :  { %4008 = vrcp.f32 %v1060_v12  ;;  %3659 = vmatpush3.bf16.msra.mxu0 %v1067_v13 }
 0xb25   :  { %1332 = vmatprep.subr.bf16.mxu0 %v3848_v36 }
 0xb2d   :  { %v4007_v14 = vpop.eup %4006 }
 0xb2e   :  { %v1063_v17 = vmul.f32 %v4007_v14, %v4003_v18  ;;  %v3866_v18 = vld [vmem:[%s4849_s8 + $0x14] ss:$8 sps:$4 sm:$0xff]  }
 0xb31   :  { %v4009_v16 = vpop.eup %4008 }
 0xb32   :  { %v1064_v19 = vmul.f32 %v4009_v16, %v4005_v62  ;;  %v3869_v62 = vld [vmem:[%s4849_s8 + $0x4] ss:$8 sps:$4 sm:$0xff]   ;;  %v3294_v16 = vld [vmem:[%s4848_s7] ss:$0 sm:$0xff] }
 0xb34   :  { %v1065_v43 = vpack.c.bf16 %v1064_v19, %v1063_v17 }
 0xb36   :  { %3661 = vmatmul.mubr.msk.bf16.vlgmr.msra.gmra.mxu0 %vm493_vm2, %v1065_v43 }
 0xb37   :  { %1364 = vmatprep.mubr.bf16.mxu0 %v4193_v27  ;;  %1333 = vmatpush1.bf16.msra.mxu0 %v3846_v35 }
 0xb38   :  { %1334 = vmatprep.subr.bf16.mxu0 %v3851_v44 }
 0xb3b   :  { %1335 = vmatpush1.bf16.msra.mxu0 %v3849_v46 }
 0xb3c   :  { %1336 = vmatprep.subr.bf16.mxu0 %v3854_v47 }
 0xb3f   :  { %1337 = vmatpush1.bf16.msra.mxu0 %v3852_v49 }
 0xb40   :  { %1338 = vmatprep.subr.bf16.mxu0 %v3857_v56 }
 0xb43   :  { %1339 = vmatpush1.bf16.msra.mxu0 %v3855_v53 }
 0xb44   :  { %1340 = vmatprep.subr.bf16.mxu0 %v3860_v57 }
 0xb47   :  { %1341 = vmatpush1.bf16.msra.mxu0 %v3858_v58 }
 0xb48   :  { %1342 = vmatprep.subr.bf16.mxu0 %v3863_v59 }
 0xb4b   :  { %1343 = vmatpush1.bf16.msra.mxu0 %v3861_v60 }
 0xb4c   :  { %1344 = vmatprep.subr.bf16.mxu0 %v3866_v18 }
 0xb4f   :  { %1345 = vmatpush1.bf16.msra.mxu0 %v3864_v61 }
 0xb50   :  { %1346 = vmatprep.subr.bf16.mxu0 %v3869_v62 }
 0xb53   :  { %1347 = vmatpush1.bf16.msra.mxu0 %v3867_v63 }
 0xbf6   :  { %v1106_v52 = vpop.f32.mrf.mxu0 }
 0xbf8   :  { %v3662_v15 = vpop.f32.mrf.mxu0 }
 0xbf9   :  { %v3872_v15 = vld [vmem:[#allocation7 + $0x70] sm:$0xff]  }
 0xbfa   :  { %v1109_v20 = vpop.f32.mrf.mxu0 }
 0xbfb   :  { %v1113_v21 = vpack.c.bf16 %v1109_v20, %v1106_v52  ;;  %v3871_v52 = vld [vmem:[#allocation7 + $0x38] sm:$0xff]   ;;  %v3873_v20 = vld [vmem:[#allocation7 + $0x30] sm:$0xff]  }
 0xbfc   :  { %v3663_v22 = vpop.f32.mrf.mxu0 }
 0xbfd   :  { %3669 = vmatmul.mubr.msk.bf16.vlgmr.msra.gmra.mxu1 %vm441_vm1, %v1113_v21  ;;  %v3874_v21 = vld [vmem:[#allocation7 + $0x68] sm:$0xff]  }
 0xbfe   :  { %3483 = vmatpush3.bf16.msra.mxu1 %v3871_v52  ;;  %v3875_v22 = vld [vmem:[#allocation7 + $0x28] sm:$0xff]  }
 0xbff   :  { %3484 = vmatprep.subr.bf16.mxu1 %v3872_v15 }
 0xc02   :  { %3485 = vmatpush3.bf16.msra.mxu1 %v3873_v20 }
 0xc03   :  { %3486 = vmatprep.subr.bf16.mxu1 %v3874_v21 }
 0xc06   :  { %3487 = vmatpush3.bf16.msra.mxu1 %v3875_v22 }
 0xcbd   :  { %v1163_v24 = vpop.f32.mrf.mxu1 }
 0xcbe   :  { %v1170_v26 = vadd.f32 %v1163_v24, %v986_v1  ;;  %v3876_v24 = vld [vmem:[#allocation7 + $0x60] sm:$0xff]  }
 0xcbf   :  { %v3670_v28 = vpop.f32.mrf.mxu1  ;;  %3488 = vmatprep.subr.bf16.mxu1 %v3876_v24 }
 0xcc0   :  { %v1179_v29 = vadd.f32 %v3292_v25, %v1170_v26  ;;  %v3878_v26 = vld [vmem:[#allocation7 + $0x58] sm:$0xff]  }
 0xcc1   :  { %v1166_v7 = vpop.f32.mrf.mxu1  ;;  %v3879_v28 = vld [vmem:[#allocation7 + $0x18] sm:$0xff]  }
 0xcc2   :  { %v1171_v30 = vadd.f32 %v1166_v7, %v987_v9  ;;  %v1181_v31 = vadd.f32 %v1179_v29, %v4349_v50  ;;  %v3880_v29 = vld [vmem:[#allocation7 + $0x50] sm:$0xff]  }
 0xcc3   :  { %v3671_v32 = vpop.f32.mrf.mxu1  ;;  %v3881_v7 = vld [vmem:[#allocation7 + $0x10] sm:$0xff]  }
 0xcc4   :  { %v1180_v33 = vadd.f32 %v3292_v25, %v1171_v30  ;;  %1185 = vadd.xlane.f32.xlu1 %v1181_v31  ;;  %v3877_v25 = vld [vmem:[#allocation7 + $0x20] sm:$0xff]   ;;  %v3882_v30 = vld [vmem:[#allocation7 + $0x48] sm:$0xff]  }
 0xcc5   :  { %3489 = vmatpush3.bf16.msra.mxu1 %v3877_v25  ;;  %v3884_v32 = vld [vmem:[#allocation7 + $0x40] sm:$0xff]  }
 0xcc6   :  { %v1182_v34 = vadd.f32 %v1180_v33, %v4351_v51  ;;  %3490 = vmatprep.subr.bf16.mxu1 %v3878_v26  ;;  %v3885_v33 = vld [vmem:[#allocation7] sm:$0xff]  }
 0xcc8   :  { %1187 = vadd.xlane.f32.xlu1 %v1182_v34 }
 0xcc9   :  { %3491 = vmatpush3.bf16.msra.mxu1 %v3879_v28 }
 0xcca   :  { %3492 = vmatprep.subr.bf16.mxu1 %v3880_v29  ;;  %v3311_v29 = vld [vmem:[%s4852_s11] ss:$0 sm:$0xff] }
 0xccd   :  { %3493 = vmatpush3.bf16.msra.mxu1 %v3881_v7 }
 0xcce   :  { %3494 = vmatprep.subr.bf16.mxu1 %v3882_v30 }
 0xd4d   :  { %v1186_v37 = vpop.xlane.xlu1 %1185 }
 0xd4e   :  { %v1189_v38 = vmul.f32 0.0078125, %v1186_v37 }
 0xd50   :  { %v1191_v39 = vsub.f32 %v1181_v31, %v1189_v38  ;;  %v3883_v31 = vld [vmem:[#allocation7 + $0x8] sm:$0xff]  }
 0xd51   :  { %v1188_v50 = vpop.xlane.xlu1 %1187  ;;  %3495 = vmatpush3.bf16.msra.mxu1 %v3883_v31 }
 0xd52   :  { %v1190_v40 = vmul.f32 0.0078125, %v1188_v50  ;;  %v1193_v41 = vmul.f32 %v1191_v39, %v1191_v39  ;;  %3496 = vmatprep.subr.bf16.mxu1 %v3884_v32 }
 0xd54   :  { %v1192_v42 = vsub.f32 %v1182_v34, %v1190_v40  ;;  %1195 = vadd.xlane.f32.xlu1 %v1193_v41  ;;  %v1240_v34 = vld [vmem:[%s4850_s9] sm:$0x3] }
 0xd55   :  { %3497 = vmatpush3.bf16.msra.mxu1 %v3885_v33  ;;  %v1245_v35 = vrot.slane %v1240_v34, %v4369_v2  ;;  %v1249_v36 = vrot.slane %v1240_v34, %v4362_v55 }
 0xd56   :  { %v1194_v51 = vmul.f32 %v1192_v42, %v1192_v42  ;;  %3672 = vmatprep.subr.bf16.mxu1 %v4192_v4 }
 0xd58   :  { %1197 = vadd.xlane.f32.xlu1 %v1194_v51 }
 0xddd   :  { %v1196_v23 = vpop.xlane.xlu1 %1195 }
 0xdde   :  { %v1199_v0 = vmul.f32 0.0078125, %v1196_v23 }
 0xde0   :  { %v1201_v1 = vadd.f32 1e-12, %v1199_v0 }
 0xde1   :  { %v1198_v3 = vpop.xlane.xlu1 %1197 }
 0xde2   :  { %4010 = vrsqrt.f32 %v1201_v1  ;;  %v1200_v5 = vmul.f32 0.0078125, %v1198_v3 }
 0xde4   :  { %v1202_v8 = vadd.f32 1e-12, %v1200_v5 }
 0xde6   :  { %4012 = vrsqrt.f32 %v1202_v8 }
 0xdef   :  { %v4011_v9 = vpop.eup %4010 }
 0xdf0   :  { %v1205_v10 = vmul.f32 %v4011_v9, %v1191_v39 }
 0xdf2   :  { %v1213_v14 = vmul.f32 %v3293_v11, %v1205_v10 }
 0xdf3   :  { %v4013_v12 = vpop.eup %4012 }
 0xdf4   :  { %v1206_v13 = vmul.f32 %v4013_v12, %v1192_v42  ;;  %v4558_v19 = vadd.f32 %v3294_v16, %v1213_v14 }
 0xdf6   :  { %v1214_v17 = vmul.f32 %v3293_v11, %v1206_v13 }
 0xdf8   :  { %v4560_v43 = vadd.f32 %v3294_v16, %v1214_v17 }
 0xdfa   :  { %v1239_v48 = vpack.c.bf16 %v4560_v43, %v4558_v19 }
 0xdfc   :  { %1365 = vmatmul.mubr.bf16.vlgmr.msra.gmra.mxu0 %v1239_v48 }
 0xdfd   :  { %1843 = vmatprep.mubr.bf16.mxu0 %v4193_v27 }
 0xebc   :  { %v1366_v37 = vpop.f32.mrf.mxu0 }
 0xebd   :  { %v1367_v38 = vadd.f32 %v1366_v37, %v1245_v35 }
 0xebe   :  { %v1368_v39 = vpop.f32.mrf.mxu0 }
 0xebf   :  { %v1379_v50 = vmul.f32 0.044715, %v1367_v38  ;;  %v1369_v40 = vadd.f32 %v1368_v39, %v1249_v36  ;;  %v1375_v15 = vmul.f32 0.5, %v1367_v38  ;;  %v3888_v39 = vld [vmem:[#allocation2 + $0x16c] ss:$12 sps:$4 sm:$0xff]  }
 0xec0   :  { %v1370_v41 = vpop.f32.mrf.mxu0  ;;  %1811 = vmatprep.subr.bf16.mxu0 %v3888_v39 }
 0xec1   :  { %v1383_v42 = vmul.f32 %v1379_v50, %v1367_v38  ;;  %v1380_v51 = vmul.f32 0.044715, %v1369_v40  ;;  %v1371_v44 = vadd.f32 %v1370_v41, %v1245_v35  ;;  %v1376_v48 = vmul.f32 0.5, %v1369_v40  ;;  %v3889_v50 = vld [vmem:[#allocation2 + $0x170] ss:$12 sps:$4 sm:$0xff]  }
 0xec2   :  { %v1372_v46 = vpop.f32.mrf.mxu0 }
 0xec3   :  { %v1387_v47 = vmul.f32 %v1383_v42, %v1367_v38  ;;  %v1384_v49 = vmul.f32 %v1380_v51, %v1369_v40  ;;  %v1381_v53 = vmul.f32 0.044715, %v1371_v44  ;;  %v1373_v56 = vadd.f32 %v1372_v46, %v1249_v36 }
 0xec4   :  { %v1377_v16 = vmul.f32 0.5, %v1371_v44 }
 0xec5   :  { %v1391_v57 = vadd.f32 %v1387_v47, %v1367_v38  ;;  %v1388_v58 = vmul.f32 %v1384_v49, %v1369_v40  ;;  %v1385_v59 = vmul.f32 %v1381_v53, %v1371_v44  ;;  %v1382_v60 = vmul.f32 0.044715, %v1373_v56  ;;  %v3886_v38 = vld [vmem:[#allocation2 + $0x168] ss:$12 sps:$4 sm:$0xff]   ;;  %v3890_v49 = vld [vmem:[#allocation2 + $0x150] ss:$12 sps:$4 sm:$0xff]  }
 0xec6   :  { %v1378_v45 = vmul.f32 0.5, %v1373_v56  ;;  %1812 = vmatpush1.bf16.msra.mxu0 %v3886_v38  ;;  %v3892_v47 = vld [vmem:[#allocation2 + $0x154] ss:$12 sps:$4 sm:$0xff]   ;;  %v3893_v53 = vld [vmem:[#allocation2 + $0x158] ss:$12 sps:$4 sm:$0xff]  }
 0xec7   :  { %v1389_v18 = vmul.f32 %v1385_v59, %v1371_v44  ;;  %v1386_v61 = vmul.f32 %v1382_v60, %v1373_v56  ;;  %v1392_v62 = vadd.f32 %v1388_v58, %v1369_v40  ;;  %v1395_v63 = vmul.f32 0.7978846, %v1391_v57  ;;  %1813 = vmatprep.subr.bf16.mxu0 %v3892_v47  ;;  %v3894_v57 = vld [vmem:[#allocation2 + $0x138] ss:$12 sps:$4 sm:$0xff]   ;;  %v3897_v58 = vld [vmem:[#allocation2 + $0x140] ss:$12 sps:$4 sm:$0xff]  }
 0xec8   :  { %v3898_v59 = vld [vmem:[#allocation2 + $0x120] ss:$12 sps:$4 sm:$0xff]   ;;  %v3900_v60 = vld [vmem:[#allocation2 + $0x124] ss:$12 sps:$4 sm:$0xff]  }
 0xec9   :  { %v1393_v23 = vadd.f32 %v1389_v18, %v1371_v44  ;;  %v1390_v0 = vmul.f32 %v1386_v61, %v1373_v56  ;;  %v1396_v1 = vmul.f32 0.7978846, %v1392_v62  ;;  %v3901_v18 = vld [vmem:[#allocation2 + $0x128] ss:$12 sps:$4 sm:$0xff]   ;;  %v3904_v61 = vld [vmem:[#allocation2 + $0x10c] ss:$12 sps:$4 sm:$0xff]  }
 0xeca   :  { %1814 = vmatpush1.bf16.msra.mxu0 %v3890_v49  ;;  %v3902_v62 = vld [vmem:[#allocation2 + $0x108] ss:$12 sps:$4 sm:$0xff]  }
 0xecb   :  { %v1397_v3 = vmul.f32 0.7978846, %v1393_v23  ;;  %v1394_v5 = vadd.f32 %v1390_v0, %v1373_v56  ;;  %4014 = vtanh.f32 %v1396_v1  ;;  %v3896_v56 = vld [vmem:[#allocation2 + $0x13c] ss:$12 sps:$4 sm:$0xff]   ;;  %v3908_v23 = vld [vmem:[#allocation2 + $0xf4] ss:$12 sps:$4 sm:$0xff]  }
 0xecc   :  { %4016 = vtanh.f32 %v1395_v63  ;;  %1815 = vmatprep.subr.bf16.mxu0 %v3896_v56  ;;  %v3905_v63 = vld [vmem:[#allocation2 + $0x110] ss:$12 sps:$4 sm:$0xff]   ;;  %v3909_v1 = vld [vmem:[#allocation2 + $0xf8] ss:$12 sps:$4 sm:$0xff]  }
 0xecd   :  { %4018 = vtanh.f32 %v1397_v3  ;;  %v1398_v8 = vmul.f32 0.7978846, %v1394_v5  ;;  %v3906_v0 = vld [vmem:[#allocation2 + $0xf0] ss:$12 sps:$4 sm:$0xff]   ;;  %v3910_v5 = vld [vmem:[#allocation2 + $0xd8] ss:$12 sps:$4 sm:$0xff]  }
 0xece   :  { %1816 = vmatpush1.bf16.msra.mxu0 %v3894_v57  ;;  %v3912_v3 = vld [vmem:[#allocation2 + $0xdc] ss:$12 sps:$4 sm:$0xff]  }
 0xecf   :  { %4020 = vtanh.f32 %v1398_v8  ;;  %1817 = vmatprep.subr.bf16.mxu0 %v3900_v60  ;;  %v3913_v8 = vld [vmem:[#allocation2 + $0xe0] ss:$12 sps:$4 sm:$0xff]  }
 0xed2   :  { %1818 = vmatpush1.bf16.msra.mxu0 %v3898_v59  ;;  %v4647_v59 = vld [vmem:[%s4867_s28] sm:$0xff] }
 0xed3   :  { %1819 = vmatprep.subr.bf16.mxu0 %v3904_v61 }
 0xed6   :  { %1820 = vmatpush1.bf16.msra.mxu0 %v3902_v62 }
 0xed7   :  { %1821 = vmatprep.subr.bf16.mxu0 %v3908_v23  ;;  %v4654_v23 = vld [vmem:[%s4867_s28 + $0x8] sm:$0xff] }
 0xed8   :  { %v4015_v9 = vpop.eup %4014 }
 0xed9   :  { %v4017_v10 = vpop.eup %4016  ;;  %v1404_v12 = vadd.f32 1.0, %v4015_v9  ;;  %v3916_v9 = vld [vmem:[#allocation2 + $0xc4] ss:$12 sps:$4 sm:$0xff]  }
 0xeda   :  { %v4019_v11 = vpop.eup %4018  ;;  %v1403_v17 = vadd.f32 1.0, %v4017_v10  ;;  %1822 = vmatpush1.bf16.msra.mxu0 %v3906_v0  ;;  %v3914_v10 = vld [vmem:[#allocation2 + $0xc0] ss:$12 sps:$4 sm:$0xff]  }
 0xedb   :  { %v1405_v13 = vadd.f32 1.0, %v4019_v11  ;;  %v1408_v21 = vmul.f32 %v1404_v12, %v1376_v48  ;;  %1823 = vmatprep.subr.bf16.mxu0 %v3912_v3  ;;  %v3917_v11 = vld [vmem:[#allocation2 + $0xc8] ss:$12 sps:$4 sm:$0xff]  }
 0xedc   :  { %v4021_v14 = vpop.eup %4020  ;;  %v1407_v24 = vmul.f32 %v1403_v17, %v1375_v15  ;;  %v3328_v15 = vld [vmem:[%s4853_s12] ss:$0 sm:$0xff] }
 0xedd   :  { %v1406_v52 = vadd.f32 1.0, %v4021_v14  ;;  %v1409_v20 = vmul.f32 %v1405_v13, %v1377_v16 }
 0xede   :  { %1824 = vmatpush1.bf16.msra.mxu0 %v3910_v5 }
 0xedf   :  { %v1410_v22 = vmul.f32 %v1406_v52, %v1378_v45  ;;  %v1443_v26 = vpack.c.bf16 %v1409_v20, %v1407_v24  ;;  %1825 = vmatprep.subr.bf16.mxu0 %v3916_v9  ;;  %v3329_v24 = vld [vmem:[%s4854_s13] ss:$0 sm:$0xff] }
 0xee1   :  { %v1444_v25 = vpack.c.bf16 %v1410_v22, %v1408_v21 }
 0xee2   :  { %1826 = vmatpush1.bf16.msra.mxu0 %v3914_v10 }
 0xee3   :  { %1580 = vmatprep.mubr.bf16.mxu1 %v1444_v25  ;;  %3692 = vmatprep.subr.bf16.mxu0 %v4192_v4 }
 0xee4   :  { %1581 = vmatmul.mubr.bf16.vlgmr.msra.gmra.mxu1 %v1443_v26 }
 0xee5   :  { %3688 = vmatprep.mubr.msk.bf16.mxu1 %vm4194_vm0, %v4192_v4  ;;  %3673 = vmatpush3.bf16.msra.mxu1 %v3889_v50 }
 0xee6   :  { %3674 = vmatprep.subr.bf16.mxu1 %v4192_v4 }
 0xee9   :  { %3675 = vmatpush3.bf16.msra.mxu1 %v3893_v53 }
 0xeea   :  { %3676 = vmatprep.subr.bf16.mxu1 %v4192_v4 }
 0xeed   :  { %3677 = vmatpush3.bf16.msra.mxu1 %v3897_v58 }
 0xeee   :  { %3678 = vmatprep.subr.bf16.mxu1 %v4192_v4 }
 0xef1   :  { %3679 = vmatpush3.bf16.msra.mxu1 %v3901_v18 }
 0xef2   :  { %3680 = vmatprep.subr.bf16.mxu1 %v4192_v4 }
 0xef5   :  { %3681 = vmatpush3.bf16.msra.mxu1 %v3905_v63 }
 0xef6   :  { %3682 = vmatprep.subr.bf16.mxu1 %v4192_v4 }
 0xef9   :  { %3683 = vmatpush3.bf16.msra.mxu1 %v3909_v1 }
 0xefa   :  { %3684 = vmatprep.subr.bf16.mxu1 %v4192_v4 }
 0xefd   :  { %3685 = vmatpush3.bf16.msra.mxu1 %v3913_v8 }
 0xefe   :  { %3686 = vmatprep.subr.bf16.mxu1 %v4192_v4 }
 0xf01   :  { %3687 = vmatpush3.bf16.msra.mxu1 %v3917_v11 }
 0xf02   :  { %3698 = vmatprep.subr.bf16.mxu1 %v4192_v4 }
 0xfa4   :  { %v3498_v28 = vpop.f32.mrf.mxu1 }
 0xfa6   :  { %v3499_v7 = vpop.f32.mrf.mxu1 }
 0xfa7   :  { %v3500_v30 = vadd.f32 %v3499_v7, %v3498_v28  ;;  %v3330_v7 = vld [vmem:[%s4844_s3 + $0x3] sm:$0x7] }
 0xfa8   :  { %v3501_v31 = vpop.f32.mrf.mxu1 }
 0xfa9   :  { %v1583_v32 = vadd.f32 %v3500_v30, %v3311_v29 }
 0xfaa   :  { %v3502_v33 = vpop.f32.mrf.mxu1 }
 0xfab   :  { %v3503_v34 = vadd.f32 %v3502_v33, %v3501_v31  ;;  %v1589_v35 = vadd.f32 %v1583_v32, %v4558_v19  ;;  %v1679_v32 = vrot.slane %v3330_v7, %v206_v6 }
 0xfad   :  { %v1586_v36 = vadd.f32 %v3503_v34, %v3311_v29  ;;  %1593 = vadd.xlane.f32.xlu1 %v1589_v35 }
 0xfaf   :  { %v1590_v37 = vadd.f32 %v1586_v36, %v4560_v43 }
 0xfb1   :  { %1595 = vadd.xlane.f32.xlu1 %v1590_v37 }
0x1036   :  { %v1594_v40 = vpop.xlane.xlu1 %1593 }
0x1037   :  { %v1597_v41 = vmul.f32 0.0078125, %v1594_v40 }
0x1039   :  { %v4579_v42 = vsub.f32 %v1589_v35, %v1597_v41  ;;  %v1675_v35 = vrot.slane %v3330_v7, %v4362_v55  ;;  %v1671_v41 = vrot.slane %v3330_v7, %v4369_v2 }
0x103a   :  { %v1596_v51 = vpop.xlane.xlu1 %1595 }
0x103b   :  { %v1598_v44 = vmul.f32 0.0078125, %v1596_v51  ;;  %v1601_v19 = vmul.f32 %v4579_v42, %v4579_v42 }
0x103d   :  { %v4583_v46 = vsub.f32 %v1590_v37, %v1598_v44  ;;  %1603 = vadd.xlane.f32.xlu0 %v1601_v19 }
0x103f   :  { %v1602_v43 = vmul.f32 %v4583_v46, %v4583_v46 }
0x1041   :  { %1605 = vadd.xlane.f32.xlu1 %v1602_v43 }
0x10c6   :  { %v1604_v12 = vpop.xlane.xlu0 %1603 }
0x10c7   :  { %v1607_v13 = vmul.f32 0.0078125, %v1604_v12 }
0x10c9   :  { %v1609_v14 = vadd.f32 1e-12, %v1607_v13 }
0x10ca   :  { %v1606_v16 = vpop.xlane.xlu1 %1605 }
0x10cb   :  { %4022 = vrsqrt.f32 %v1609_v14  ;;  %v1608_v17 = vmul.f32 0.0078125, %v1606_v16 }
0x10cd   :  { %v1610_v48 = vadd.f32 1e-12, %v1608_v17 }
0x10cf   :  { %4024 = vrsqrt.f32 %v1610_v48 }
0x10d8   :  { %v4023_v45 = vpop.eup %4022 }
0x10d9   :  { %v1613_v52 = vmul.f32 %v4023_v45, %v4579_v42 }
0x10db   :  { %v1621_v22 = vmul.f32 %v3328_v15, %v1613_v52 }
0x10dc   :  { %v4025_v20 = vpop.eup %4024 }
0x10dd   :  { %v1614_v21 = vmul.f32 %v4025_v20, %v4583_v46  ;;  %v4603_v26 = vadd.f32 %v3329_v24, %v1621_v22 }
0x10df   :  { %v1622_v25 = vmul.f32 %v3328_v15, %v1614_v21 }
0x10e1   :  { %v4605_v28 = vadd.f32 %v3329_v24, %v1622_v25 }
0x10e3   :  { %v1664_v29 = vpack.c.bf16 %v4605_v28, %v4603_v26 }
0x10e5   :  { %1844 = vmatmul.mubr.bf16.vlgmr.msra.gmra.mxu0 %v1664_v29  ;;  %3689 = vmatmul.mubr.bf16.vlgmr.msra.gmra.mxu1 %v1664_v29 }
0x10e6   :  { %3694 = vmatprep.mubr.msk.bf16.mxu0 %vm4194_vm0, %v4192_v4  ;;  %3700 = vmatprep.mubr.msk.bf16.mxu1 %vm4194_vm0, %v4192_v4 }
0x11a5   :  { %v1845_v30 = vpop.f32.mrf.mxu0  ;;  %v1888_v31 = vpop.f32.mrf.mxu1 }
0x11a6   :  { %v1889_v38 = vadd.f32 %v1888_v31, %v1679_v32  ;;  %v1846_v54 = vadd.f32 %v1845_v30, %v1671_v41 }
0x11a7   :  { %v1847_v33 = vpop.f32.mrf.mxu0  ;;  %v3690_v34 = vpop.f32.mrf.mxu1 }
0x11a8   :  { %v1848_v42 = vadd.f32 %v1847_v33, %v1675_v35 }
0x11a9   :  { %v1849_v36 = vpop.f32.mrf.mxu0  ;;  %v1891_v37 = vpop.f32.mrf.mxu1 }
0x11aa   :  { %v1892_v39 = vadd.f32 %v1891_v37, %v1679_v32  ;;  %v1850_v19 = vadd.f32 %v1849_v36, %v1671_v41 }
0x11ab   :  { %v1851_v50 = vpop.f32.mrf.mxu0  ;;  %v3691_v40 = vpop.f32.mrf.mxu1 }
0x11ac   :  { %v4620_v51 = vpack.c.bf16 %v1892_v39, %v1889_v38  ;;  %v1852_v44 = vadd.f32 %v1851_v50, %v1675_v35  ;;  %v4630_v43 = vpack.c.bf16 %v1850_v19, %v1846_v54  ;;  %v3920_v19 = vld [vmem:[#allocation5 + $0x58] sm:$0xff]  }
0x11ae   :  { %v4622_v46 = vpack.c.bf16 %v1852_v44, %v1848_v42  ;;  %3699 = vmatpush3.bf16.msra.mxu1 %v4620_v51 }
0x11af   :  { %3710 = vmatprep.subr.bf16.mxu1 %v4192_v4 }
0x11b0   :  { %2038 = vrot.lane.b32.xlu1 %v4622_v46, %s4195_s21  ;;  %v1918_v6 = vsel %vm441_vm1, %v4622_v46, 0 }
0x11b1   :  { %3693 = vmatpush3.bf16.xpose.msra.mxu0 %v1918_v6 }
0x11b2   :  { %3704 = vmatprep.subr.bf16.mxu0 %v4192_v4 }
0x11b4   :  { %2035 = vrot.lane.b32.xlu1 %v4630_v43, %s4195_s21 }
0x11b8   :  { %3695 = vmatmul.mubr.msk.bf16.vlgmr.msra.gmra.mxu0 %vm441_vm1, %v4630_v43 }
0x11b9   :  { %3706 = vmatprep.mubr.msk.bf16.mxu0 %vm4194_vm0, %v4192_v4 }
0x1222   :  { %v2039_v47 = vpop.permute.xlu1 %2038 }
0x1223   :  { %v2044_v49 = vsel %vm441_vm1, %v2039_v47, 0 }
0x1224   :  { %3705 = vmatpush3.bf16.xpose.msra.mxu0 %v2044_v49 }
0x1225   :  { %3716 = vmatprep.subr.bf16.mxu0 %v4192_v4 }
0x1226   :  { %v2036_v53 = vpop.permute.xlu1 %2035 }
0x122b   :  { %3707 = vmatmul.mubr.msk.bf16.vlgmr.msra.gmra.mxu0 %vm441_vm1, %v2036_v53 }
0x122c   :  { %3720 = vmatprep.mubr.msk.bf16.mxu0 %vm4194_vm0, %v4192_v4  ;;  %3717 = vmatpush3.bf16.msra.mxu0 %v3920_v19 }
0x122d   :  { %3718 = vmatprep.subr.bf16.mxu0 %v4192_v4 }
0x1278   :  { %v1954_v56 = vpop.f32.mrf.mxu0 }
0x1279   :  { %v1961_v57 = vmul.f32 0.17677669, %v1954_v56 }
0x127a   :  { %v3696_v58 = vpop.f32.mrf.mxu0 }
0x127b   :  { %v1963_v60 = vadd.f32 %v4647_v59, %v1961_v57  ;;  %v3918_v58 = vld [vmem:[#allocation5 + $0x48] sm:$0xff]  }
0x127c   :  { %v1957_v18 = vpop.f32.mrf.mxu0 }
0x127d   :  { %v1962_v61 = vmul.f32 0.17677669, %v1957_v18  ;;  %v1965_v62 = vsel %vm493_vm2, %v1963_v60, -inf  ;;  %v3919_v18 = vld [vmem:[#allocation5 + $0x40] sm:$0xff]  }
0x127e   :  { %1966 = vmax.xlane.f32.xlu1 %v1965_v62  ;;  %v3697_v63 = vpop.f32.mrf.mxu0 }
0x127f   :  { %v1964_v0 = vadd.f32 %v4654_v23, %v1962_v61  ;;  %v3921_v61 = vld [vmem:[#allocation5 + $0x50] sm:$0xff]  }
0x1280   :  { %3719 = vmatpush3.bf16.msra.mxu0 %v3921_v61 }
0x1281   :  { %v1968_v1 = vsel %vm493_vm2, %v1964_v0, -inf  ;;  %3732 = vmatprep.subr.bf16.mxu0 %v4192_v4 }
0x1282   :  { %1969 = vmax.xlane.f32.xlu0 %v1968_v1 }
0x128f   :  { %2277 = vrot.lane.b32.xlu1 %v4622_v46, %s4185_s30 }
0x1293   :  { %2275 = vrot.lane.b32.xlu1 %v4630_v43, %s4185_s30 }
0x12eb   :  { %v2080_v3 = vpop.f32.mrf.mxu0 }
0x12ec   :  { %v2087_v5 = vmul.f32 0.17677669, %v2080_v3 }
0x12ed   :  { %v3708_v8 = vpop.f32.mrf.mxu0 }
0x12ee   :  { %v2089_v9 = vadd.f32 %v4647_v59, %v2087_v5 }
0x12ef   :  { %v2083_v10 = vpop.f32.mrf.mxu0 }
0x12f0   :  { %v2088_v11 = vmul.f32 0.17677669, %v2083_v10  ;;  %v2091_v12 = vsel %vm493_vm2, %v2089_v9, -inf }
0x12f1   :  { %2092 = vmax.xlane.f32.xlu0 %v2091_v12  ;;  %v3709_v13 = vpop.f32.mrf.mxu0 }
0x12f2   :  { %v2090_v14 = vadd.f32 %v4654_v23, %v2088_v11 }
0x12f4   :  { %v2094_v16 = vsel %vm493_vm2, %v2090_v14, -inf }
0x12f5   :  { %2095 = vmax.xlane.f32.xlu0 %v2094_v16 }
0x1307   :  { %v1967_v17 = vpop.xlane.xlu1 %1966 }
0x1308   :  { %v1971_v48 = vsub.f32 %v1963_v60, %v1967_v17 }
0x130a   :  { %v1973_v45 = vmul.f32 1.442695, %v1971_v48 }
0x130b   :  { %v1970_v52 = vpop.xlane.xlu0 %1969 }
0x130c   :  { %4026 = vpow2.f32 %v1973_v45  ;;  %v1972_v15 = vsub.f32 %v1964_v0, %v1970_v52 }
0x130e   :  { %v1975_v20 = vmul.f32 1.442695, %v1972_v15 }
0x1310   :  { %4028 = vpow2.f32 %v1975_v20 }
0x1319   :  { %v4027_v21 = vpop.eup %4026 }
0x131a   :  { %v1977_v22 = vsel %vm493_vm2, %v4027_v21, 0.0 }
0x131b   :  { %1978 = vadd.xlane.f32.xlu0 %v1977_v22 }
0x131d   :  { %v4029_v24 = vpop.eup %4028 }
0x131e   :  { %v1980_v25 = vsel %vm493_vm2, %v4029_v24, 0.0 }
0x131f   :  { %1981 = vadd.xlane.f32.xlu0 %v1980_v25 }
0x137a   :  { %v2093_v29 = vpop.xlane.xlu0 %2092 }
0x137b   :  { %v2097_v7 = vsub.f32 %v2089_v9, %v2093_v29  ;;  %v2278_v9 = vpop.permute.xlu1 %2277 }
0x137c   :  { %v2283_v13 = vsel %vm441_vm1, %v2278_v9, 0 }
0x137d   :  { %v2099_v30 = vmul.f32 1.442695, %v2097_v7 }
0x137e   :  { %v2096_v31 = vpop.xlane.xlu0 %2095 }
0x137f   :  { %4030 = vpow2.f32 %v2099_v30  ;;  %v2098_v32 = vsub.f32 %v2090_v14, %v2096_v31  ;;  %v2276_v14 = vpop.permute.xlu1 %2275 }
0x1381   :  { %v2101_v33 = vmul.f32 1.442695, %v2098_v32 }
0x1383   :  { %4032 = vpow2.f32 %v2101_v33 }
0x138c   :  { %v4031_v34 = vpop.eup %4030 }
0x138d   :  { %v2103_v35 = vsel %vm493_vm2, %v4031_v34, 0.0 }
0x138e   :  { %2104 = vadd.xlane.f32.xlu0 %v2103_v35 }
0x1390   :  { %v4033_v36 = vpop.eup %4032 }
0x1391   :  { %v2106_v37 = vsel %vm493_vm2, %v4033_v36, 0.0 }
0x1392   :  { %2107 = vadd.xlane.f32.xlu0 %v2106_v37 }
0x13a4   :  { %v1979_v38 = vpop.xlane.xlu0 %1978 }
0x13a5   :  { %4034 = vrcp.f32 %v1979_v38 }
0x13a8   :  { %2115 = vrot.lane.b32.xlu0 %v4620_v51, %s4195_s21  ;;  %v1982_v39 = vpop.xlane.xlu0 %1981 }
0x13a9   :  { %4036 = vrcp.f32 %v1982_v39 }
0x13b2   :  { %v4035_v50 = vpop.eup %4034 }
0x13b3   :  { %v1985_v41 = vmul.f32 %v4035_v50, %v4027_v21 }
0x13b6   :  { %v4037_v40 = vpop.eup %4036 }
0x13b7   :  { %v1986_v42 = vmul.f32 %v4037_v40, %v4029_v24 }
0x13b9   :  { %v1987_v44 = vpack.c.bf16 %v1986_v42, %v1985_v41 }
0x13bb   :  { %3701 = vmatmul.mubr.msk.bf16.vlgmr.msra.gmra.mxu1 %vm493_vm2, %v1987_v44 }
0x13bc   :  { %3712 = vmatprep.mubr.msk.bf16.mxu1 %vm4194_vm0, %v4192_v4 }
0x1417   :  { %v2105_v54 = vpop.xlane.xlu0 %2104 }
0x1418   :  { %4038 = vrcp.f32 %v2105_v54 }
0x141b   :  { %v2108_v6 = vpop.xlane.xlu0 %2107 }
0x141c   :  { %4040 = vrcp.f32 %v2108_v6 }
0x141f   :  { %v2116_v47 = vpop.permute.xlu0 %2115 }
0x1420   :  { %3711 = vmatpush3.bf16.msra.mxu1 %v2116_v47 }
0x1421   :  { %3724 = vmatprep.subr.bf16.mxu1 %v4192_v4 }
0x1425   :  { %v4039_v49 = vpop.eup %4038 }
0x1426   :  { %v2111_v56 = vmul.f32 %v4039_v49, %v4031_v34 }
0x1429   :  { %v4041_v53 = vpop.eup %4040 }
0x142a   :  { %v2112_v57 = vmul.f32 %v4041_v53, %v4033_v36 }
0x142c   :  { %v2113_v60 = vpack.c.bf16 %v2112_v57, %v2111_v56 }
0x142e   :  { %3713 = vmatmul.mubr.msk.bf16.vlgmr.msra.gmra.mxu1 %vm493_vm2, %v2113_v60  ;;  %v3922_v60 = vld [vmem:[#allocation5 + $0x68] sm:$0xff]  }
0x142f   :  { %3725 = vmatpush3.bf16.msra.mxu1 %v3918_v58  ;;  %3728 = vmatprep.mubr.msk.bf16.mxu1 %vm4194_vm0, %v4192_v4 }
0x1430   :  { %3726 = vmatprep.subr.bf16.mxu1 %v4192_v4 }
0x1433   :  { %3727 = vmatpush3.bf16.msra.mxu1 %v3919_v18  ;;  %v3923_v18 = vld [vmem:[#allocation5 + $0x60] sm:$0xff]  }
0x1434   :  { %3738 = vmatprep.subr.bf16.mxu1 %v4192_v4 }
0x147b   :  { %v2026_v62 = vpop.f32.mrf.mxu1 }
0x147d   :  { %v3702_v63 = vpop.f32.mrf.mxu1 }
0x147f   :  { %v2029_v0 = vpop.f32.mrf.mxu1 }
0x1480   :  { %v2033_v1 = vpack.c.bf16 %v2029_v0, %v2026_v62 }
0x1481   :  { %v3703_v3 = vpop.f32.mrf.mxu1 }
0x1482   :  { %3729 = vmatmul.mubr.msk.bf16.vlgmr.msra.gmra.mxu1 %vm441_vm1, %v2033_v1 }
0x1483   :  { %3740 = vmatprep.mubr.msk.bf16.mxu1 %vm4194_vm0, %v4192_v4 }
0x14ee   :  { %v2155_v5 = vpop.f32.mrf.mxu1 }
0x14f0   :  { %v3714_v8 = vpop.f32.mrf.mxu1 }
0x14f2   :  { %v2158_v10 = vpop.f32.mrf.mxu1 }
0x14f3   :  { %v2162_v11 = vpack.c.bf16 %v2158_v10, %v2155_v5 }
0x14f4   :  { %v3715_v12 = vpop.f32.mrf.mxu1 }
0x14f5   :  { %3721 = vmatmul.mubr.msk.bf16.vlgmr.msra.gmra.mxu0 %vm441_vm1, %v2162_v11 }
0x14f6   :  { %3733 = vmatpush3.bf16.xpose.msra.mxu0 %v2283_v13  ;;  %3734 = vmatprep.mubr.msk.bf16.mxu0 %vm4194_vm0, %v4192_v4 }
0x14f7   :  { %3744 = vmatprep.subr.bf16.mxu0 %v4192_v4 }
0x14fd   :  { %3735 = vmatmul.mubr.msk.bf16.vlgmr.msra.gmra.mxu0 %vm441_vm1, %v2276_v14 }
0x14fe   :  { %3748 = vmatprep.mubr.msk.bf16.mxu0 %vm4194_vm0, %v4192_v4  ;;  %3745 = vmatpush3.bf16.msra.mxu0 %v3922_v60 }
0x14ff   :  { %3746 = vmatprep.subr.bf16.mxu0 %v4192_v4 }
0x1502   :  { %3747 = vmatpush3.bf16.msra.mxu0 %v3923_v18 }
0x1503   :  { %3758 = vmatprep.subr.bf16.mxu0 %v4192_v4 }
0x1542   :  { %v4694_v16 = vpop.f32.mrf.mxu1 }
0x1544   :  { %v3730_v17 = vpop.f32.mrf.mxu1 }
0x1546   :  { %v4696_v48 = vpop.f32.mrf.mxu1 }
0x1548   :  { %v3731_v45 = vpop.f32.mrf.mxu1 }
0x15b5   :  { %v4698_v52 = vpop.f32.mrf.mxu0 }
0x15b7   :  { %v3722_v15 = vpop.f32.mrf.mxu0 }
0x15b9   :  { %v4700_v20 = vpop.f32.mrf.mxu0 }
0x15bb   :  { %v3723_v21 = vpop.f32.mrf.mxu0 }
0x15bd   :  { %v2319_v22 = vpop.f32.mrf.mxu0 }
0x15be   :  { %v2326_v24 = vmul.f32 0.17677669, %v2319_v22 }
0x15bf   :  { %v3736_v25 = vpop.f32.mrf.mxu0 }
0x15c0   :  { %v2328_v29 = vadd.f32 %v4647_v59, %v2326_v24 }
0x15c1   :  { %v2322_v7 = vpop.f32.mrf.mxu0 }
0x15c2   :  { %v2327_v30 = vmul.f32 0.17677669, %v2322_v7  ;;  %v2330_v31 = vsel %vm493_vm2, %v2328_v29, -inf }
0x15c3   :  { %2331 = vmax.xlane.f32.xlu0 %v2330_v31  ;;  %v3737_v32 = vpop.f32.mrf.mxu0 }
0x15c4   :  { %v2329_v33 = vadd.f32 %v4654_v23, %v2327_v30 }
0x15c6   :  { %v2333_v34 = vsel %vm493_vm2, %v2329_v33, -inf }
0x15c7   :  { %2334 = vmax.xlane.f32.xlu1 %v2333_v34  ;;  %v2272_v34 = vadd.f32 %v4696_v48, %v4700_v20  ;;  %v3925_v48 = vld [vmem:[#allocation5 + $0x70] sm:$0xff]  }
0x15d8   :  { %2461 = vrot.lane.b32.xlu1 %v4622_v46, %s4196_s22 }
0x15dc   :  { %2459 = vrot.lane.b32.xlu1 %v4630_v43, %s4196_s22 }
0x164c   :  { %v2332_v35 = vpop.xlane.xlu0 %2331 }
0x164d   :  { %v2336_v36 = vsub.f32 %v2328_v29, %v2332_v35 }
0x164f   :  { %v2338_v37 = vmul.f32 1.442695, %v2336_v36 }
0x1650   :  { %v2335_v38 = vpop.xlane.xlu1 %2334 }
0x1651   :  { %4042 = vpow2.f32 %v2338_v37  ;;  %v2337_v39 = vsub.f32 %v2329_v33, %v2335_v38 }
0x1653   :  { %v2340_v50 = vmul.f32 1.442695, %v2337_v39 }
0x1654   :  { %v2462_v53 = vpop.permute.xlu1 %2461 }
0x1655   :  { %4044 = vpow2.f32 %v2340_v50  ;;  %v2467_v57 = vsel %vm441_vm1, %v2462_v53, 0 }
0x1658   :  { %v2460_v58 = vpop.permute.xlu1 %2459 }
0x165e   :  { %v4043_v40 = vpop.eup %4042 }
0x165f   :  { %v2342_v41 = vsel %vm493_vm2, %v4043_v40, 0.0 }
0x1660   :  { %2343 = vadd.xlane.f32.xlu0 %v2342_v41 }
0x1662   :  { %v4045_v42 = vpop.eup %4044 }
0x1663   :  { %v2345_v44 = vsel %vm493_vm2, %v4045_v42, 0.0 }
0x1664   :  { %2346 = vadd.xlane.f32.xlu0 %v2345_v44 }
0x167a   :  { %2353 = vrot.lane.b32.xlu0 %v4620_v51, %s4185_s30 }
0x16e9   :  { %v2344_v46 = vpop.xlane.xlu0 %2343 }
0x16ea   :  { %4046 = vrcp.f32 %v2344_v46 }
0x16ed   :  { %v2347_v43 = vpop.xlane.xlu0 %2346 }
0x16ee   :  { %4048 = vrcp.f32 %v2347_v43 }
0x16f1   :  { %v2354_v19 = vpop.permute.xlu0 %2353 }
0x16f2   :  { %3739 = vmatpush3.bf16.msra.mxu1 %v2354_v19 }
0x16f3   :  { %3752 = vmatprep.subr.bf16.mxu1 %v4192_v4 }
0x16f7   :  { %v4047_v54 = vpop.eup %4046 }
0x16f8   :  { %v2350_v47 = vmul.f32 %v4047_v54, %v4043_v40 }
0x16fb   :  { %v4049_v6 = vpop.eup %4048 }
0x16fc   :  { %v2351_v49 = vmul.f32 %v4049_v6, %v4045_v42  ;;  %v3376_v6 = vld [vmem:[%s4846_s5 + $0x1] ss:$0 sm:$0xff] }
0x16fe   :  { %v2352_v56 = vpack.c.bf16 %v2351_v49, %v2350_v47 }
0x1700   :  { %3741 = vmatmul.mubr.msk.bf16.vlgmr.msra.gmra.mxu1 %vm493_vm2, %v2352_v56 }
0x1701   :  { %3753 = vmatpush3.bf16.xpose.msra.mxu1 %v2467_v57  ;;  %3754 = vmatprep.mubr.msk.bf16.mxu1 %vm4194_vm0, %v4192_v4 }
0x1702   :  { %3764 = vmatprep.subr.bf16.mxu1 %v4192_v4 }
0x1708   :  { %3755 = vmatmul.mubr.msk.bf16.vlgmr.msra.gmra.mxu1 %vm441_vm1, %v2460_v58 }
0x1709   :  { %3768 = vmatprep.mubr.msk.bf16.mxu1 %vm4194_vm0, %v4192_v4 }
0x17c0   :  { %v2393_v61 = vpop.f32.mrf.mxu1 }
0x17c2   :  { %v3742_v62 = vpop.f32.mrf.mxu1 }
0x17c3   :  { %v3928_v62 = vld [vmem:[%s4849_s8 + $0xf4] ss:$8 sps:$4 sm:$0xff]  }
0x17c4   :  { %v2396_v63 = vpop.f32.mrf.mxu1 }
0x17c5   :  { %v2400_v0 = vpack.c.bf16 %v2396_v63, %v2393_v61  ;;  %v3926_v61 = vld [vmem:[%s4849_s8 + $0xf0] ss:$8 sps:$4 sm:$0xff]  }
0x17c6   :  { %v3743_v1 = vpop.f32.mrf.mxu1 }
0x17c7   :  { %3749 = vmatmul.mubr.msk.bf16.vlgmr.msra.gmra.mxu0 %vm441_vm1, %v2400_v0 }
0x17c8   :  { %v2503_v3 = vpop.f32.mrf.mxu1  ;;  %3760 = vmatprep.mubr.msk.bf16.mxu0 %vm4194_vm0, %v4192_v4 }
0x17c9   :  { %v2510_v5 = vmul.f32 0.17677669, %v2503_v3 }
0x17ca   :  { %v3756_v8 = vpop.f32.mrf.mxu1 }
0x17cb   :  { %v2512_v9 = vadd.f32 %v4647_v59, %v2510_v5 }
0x17cc   :  { %v2506_v10 = vpop.f32.mrf.mxu1 }
0x17cd   :  { %v2511_v11 = vmul.f32 0.17677669, %v2506_v10  ;;  %v2514_v12 = vsel %vm493_vm2, %v2512_v9, -inf  ;;  %v3929_v10 = vld [vmem:[%s4849_s8 + $0xe0] ss:$8 sps:$4 sm:$0xff]  }
0x17ce   :  { %2515 = vmax.xlane.f32.xlu1 %v2514_v12  ;;  %v3757_v13 = vpop.f32.mrf.mxu1  ;;  %v3932_v12 = vld [vmem:[%s4849_s8 + $0xd0] ss:$8 sps:$4 sm:$0xff]  }
0x17cf   :  { %v2513_v14 = vadd.f32 %v4654_v23, %v2511_v11  ;;  %v3934_v11 = vld [vmem:[%s4849_s8 + $0xd4] ss:$8 sps:$4 sm:$0xff]   ;;  %v3935_v13 = vld [vmem:[%s4849_s8 + $0xc0] ss:$8 sps:$4 sm:$0xff]  }
0x17d1   :  { %v2517_v17 = vsel %vm493_vm2, %v2513_v14, -inf }
0x17d2   :  { %2518 = vmax.xlane.f32.xlu0 %v2517_v17  ;;  %v3940_v17 = vld [vmem:[%s4849_s8 + $0xb4] ss:$8 sps:$4 sm:$0xff]  }
0x17df   :  { %2537 = vrot.lane.b32.xlu1 %v4620_v51, %s4196_s22  ;;  %v2269_v51 = vadd.f32 %v4694_v16, %v4698_v52  ;;  %v3924_v16 = vld [vmem:[#allocation5 + $0x78] sm:$0xff]  }
0x17e0   :  { %3765 = vmatpush3.bf16.msra.mxu1 %v3924_v16  ;;  %v3952_v16 = vld [vmem:[#allocation7 + $0xf0] sm:$0xff]  }
0x17e1   :  { %3766 = vmatprep.subr.bf16.mxu1 %v4192_v4 }
0x17e4   :  { %3767 = vmatpush3.bf16.msra.mxu1 %v3925_v48  ;;  %v3953_v48 = vld [vmem:[#allocation7 + $0xb0] sm:$0xff]  }
0x1857   :  { %v2516_v45 = vpop.xlane.xlu1 %2515 }
0x1858   :  { %v2520_v15 = vsub.f32 %v2512_v9, %v2516_v45  ;;  %v3931_v9 = vld [vmem:[%s4849_s8 + $0xe4] ss:$8 sps:$4 sm:$0xff]   ;;  %v3938_v45 = vld [vmem:[%s4849_s8 + $0xb0] ss:$8 sps:$4 sm:$0xff]  }
0x185a   :  { %v2522_v21 = vmul.f32 1.442695, %v2520_v15  ;;  %v3943_v15 = vld [vmem:[%s4849_s8 + $0xa4] ss:$8 sps:$4 sm:$0xff]  }
0x185b   :  { %v2538_v22 = vpop.permute.xlu1 %2537  ;;  %v2519_v24 = vpop.xlane.xlu0 %2518 }
0x185c   :  { %4050 = vpow2.f32 %v2522_v21  ;;  %v2521_v59 = vsub.f32 %v2513_v14, %v2519_v24  ;;  %3759 = vmatpush3.bf16.msra.mxu0 %v2538_v22  ;;  %v3937_v14 = vld [vmem:[%s4849_s8 + $0xc4] ss:$8 sps:$4 sm:$0xff]   ;;  %v3941_v21 = vld [vmem:[%s4849_s8 + $0xa0] ss:$8 sps:$4 sm:$0xff]   ;;  %v3946_v22 = vld [vmem:[%s4849_s8 + $0x94] ss:$8 sps:$4 sm:$0xff]  }
0x185d   :  { %2808 = vmatprep.subr.bf16.mxu0 %v3928_v62  ;;  %v3944_v24 = vld [vmem:[%s4849_s8 + $0x90] ss:$8 sps:$4 sm:$0xff]  }
0x185e   :  { %v2524_v25 = vmul.f32 1.442695, %v2521_v59  ;;  %v3949_v59 = vld [vmem:[%s4849_s8 + $0x84] ss:$8 sps:$4 sm:$0xff]  }
0x1860   :  { %4052 = vpow2.f32 %v2524_v25  ;;  %v3947_v25 = vld [vmem:[%s4849_s8 + $0x80] ss:$8 sps:$4 sm:$0xff]  }
0x1869   :  { %v4051_v29 = vpop.eup %4050 }
0x186a   :  { %v2526_v7 = vsel %vm493_vm2, %v4051_v29, 0.0 }
0x186b   :  { %2527 = vadd.xlane.f32.xlu0 %v2526_v7 }
0x186d   :  { %v4053_v23 = vpop.eup %4052 }
0x186e   :  { %v2529_v30 = vsel %vm493_vm2, %v4053_v23, 0.0 }
0x186f   :  { %2530 = vadd.xlane.f32.xlu0 %v2529_v30 }
0x1887   :  { %v2450_v31 = vpop.f32.mrf.mxu0 }
0x1888   :  { %v2457_v32 = vadd.f32 %v2450_v31, %v2269_v51 }
0x1889   :  { %v3750_v33 = vpop.f32.mrf.mxu0 }
0x188b   :  { %v2453_v35 = vpop.f32.mrf.mxu0 }
0x188c   :  { %v2458_v36 = vadd.f32 %v2453_v35, %v2272_v34  ;;  %v3379_v34 = vld [vmem:[%s4847_s6 + $0x1] ss:$0 sm:$0xff] }
0x188d   :  { %v3751_v37 = vpop.f32.mrf.mxu0 }
0x18f4   :  { %v2528_v38 = vpop.xlane.xlu0 %2527 }
0x18f5   :  { %4054 = vrcp.f32 %v2528_v38  ;;  %v3380_v38 = vld [vmem:[%s4848_s7 + $0x1] ss:$0 sm:$0xff] }
0x18f8   :  { %v2531_v39 = vpop.xlane.xlu0 %2530 }
0x18f9   :  { %4056 = vrcp.f32 %v2531_v39 }
0x1902   :  { %v4055_v50 = vpop.eup %4054 }
0x1903   :  { %v2534_v41 = vmul.f32 %v4055_v50, %v4051_v29 }
0x1906   :  { %v4057_v40 = vpop.eup %4056 }
0x1907   :  { %v2535_v42 = vmul.f32 %v4057_v40, %v4053_v23 }
0x1909   :  { %v2536_v44 = vpack.c.bf16 %v2535_v42, %v2534_v41  ;;  %v3950_v42 = vld [vmem:[#allocation7 + $0xf8] sm:$0xff]  }
0x190a   :  { %3541 = vmatprep.subr.bf16.mxu1 %v3950_v42 }
0x190b   :  { %3761 = vmatmul.mubr.msk.bf16.vlgmr.msra.gmra.mxu0 %vm493_vm2, %v2536_v44  ;;  %v3951_v44 = vld [vmem:[#allocation7 + $0xb8] sm:$0xff]  }
0x190c   :  { %2840 = vmatprep.mubr.bf16.mxu0 %v4193_v27  ;;  %2809 = vmatpush1.bf16.msra.mxu0 %v3926_v61 }
0x190d   :  { %2810 = vmatprep.subr.bf16.mxu0 %v3931_v9 }
0x1910   :  { %2811 = vmatpush1.bf16.msra.mxu0 %v3929_v10 }
0x1911   :  { %2812 = vmatprep.subr.bf16.mxu0 %v3934_v11 }
0x1914   :  { %2813 = vmatpush1.bf16.msra.mxu0 %v3932_v12 }
0x1915   :  { %2814 = vmatprep.subr.bf16.mxu0 %v3937_v14 }
0x1918   :  { %2815 = vmatpush1.bf16.msra.mxu0 %v3935_v13 }
0x1919   :  { %2816 = vmatprep.subr.bf16.mxu0 %v3940_v17 }
0x191c   :  { %2817 = vmatpush1.bf16.msra.mxu0 %v3938_v45 }
0x191d   :  { %2818 = vmatprep.subr.bf16.mxu0 %v3943_v15 }
0x1920   :  { %2819 = vmatpush1.bf16.msra.mxu0 %v3941_v21 }
0x1921   :  { %2820 = vmatprep.subr.bf16.mxu0 %v3946_v22 }
0x1924   :  { %2821 = vmatpush1.bf16.msra.mxu0 %v3944_v24 }
0x1925   :  { %2822 = vmatprep.subr.bf16.mxu0 %v3949_v59 }
0x1928   :  { %2823 = vmatpush1.bf16.msra.mxu0 %v3947_v25 }
0x1929   :  { %3772 = vmatprep.subr.bf16.mxu0 %v4192_v4 }
0x19cb   :  { %v2577_v52 = vpop.f32.mrf.mxu0 }
0x19cd   :  { %v3762_v20 = vpop.f32.mrf.mxu0 }
0x19ce   :  { %v3955_v20 = vld [vmem:[#allocation7 + $0xa8] sm:$0xff]  }
0x19cf   :  { %v2580_v46 = vpop.f32.mrf.mxu0 }
0x19d0   :  { %v2584_v43 = vpack.c.bf16 %v2580_v46, %v2577_v52  ;;  %v3954_v52 = vld [vmem:[#allocation7 + $0xe8] sm:$0xff]   ;;  %v3956_v46 = vld [vmem:[#allocation7 + $0xe0] sm:$0xff]  }
0x19d1   :  { %v3763_v19 = vpop.f32.mrf.mxu0 }
0x19d2   :  { %3769 = vmatmul.mubr.msk.bf16.vlgmr.msra.gmra.mxu1 %vm441_vm1, %v2584_v43  ;;  %v3957_v43 = vld [vmem:[#allocation7 + $0xa0] sm:$0xff]   ;;  %v3958_v19 = vld [vmem:[#allocation7 + $0xd8] sm:$0xff]  }
0x19d3   :  { %3542 = vmatpush3.bf16.msra.mxu1 %v3951_v44 }
0x19d4   :  { %3543 = vmatprep.subr.bf16.mxu1 %v3952_v16 }
0x19d7   :  { %3544 = vmatpush3.bf16.msra.mxu1 %v3953_v48 }
0x19d8   :  { %3545 = vmatprep.subr.bf16.mxu1 %v3954_v52 }
0x19db   :  { %3546 = vmatpush3.bf16.msra.mxu1 %v3955_v20  ;;  %v3415_v20 = vld [vmem:[%s4852_s11 + $0x1] ss:$0 sm:$0xff] }
0x19dc   :  { %3547 = vmatprep.subr.bf16.mxu1 %v3956_v46 }
0x19df   :  { %3548 = vmatpush3.bf16.msra.mxu1 %v3957_v43 }
0x19e0   :  { %3549 = vmatprep.subr.bf16.mxu1 %v3958_v19 }
0x1a92   :  { %v2634_v54 = vpop.f32.mrf.mxu1 }
0x1a93   :  { %v2641_v47 = vadd.f32 %v2634_v54, %v2457_v32  ;;  %v3959_v54 = vld [vmem:[#allocation7 + $0x98] sm:$0xff]  }
0x1a94   :  { %v3770_v27 = vpop.f32.mrf.mxu1  ;;  %3550 = vmatpush3.bf16.msra.mxu1 %v3959_v54 }
0x1a95   :  { %v2651_v49 = vadd.f32 %v3376_v6, %v2641_v47  ;;  %v3961_v47 = vld [vmem:[#allocation7 + $0x90] sm:$0xff]   ;;  %v3962_v27 = vld [vmem:[#allocation7 + $0xc8] sm:$0xff]  }
0x1a96   :  { %v2637_v53 = vpop.f32.mrf.mxu1 }
0x1a97   :  { %v2642_v56 = vadd.f32 %v2637_v53, %v2458_v36  ;;  %v2653_v57 = vadd.f32 %v2651_v49, %v4603_v26  ;;  %v3963_v49 = vld [vmem:[#allocation7 + $0x88] sm:$0xff]   ;;  %v3964_v53 = vld [vmem:[#allocation7 + $0xc0] sm:$0xff]  }
0x1a98   :  { %v3771_v58 = vpop.f32.mrf.mxu1 }
0x1a99   :  { %v2652_v60 = vadd.f32 %v3376_v6, %v2642_v56  ;;  %2659 = vadd.xlane.f32.xlu0 %v2653_v57  ;;  %v3960_v6 = vld [vmem:[#allocation7 + $0xd0] sm:$0xff]   ;;  %v3965_v56 = vld [vmem:[#allocation7 + $0x80] sm:$0xff]  }
0x1a9a   :  { %3551 = vmatprep.subr.bf16.mxu1 %v3960_v6 }
0x1a9b   :  { %v2654_v18 = vadd.f32 %v2652_v60, %v4605_v28  ;;  %3552 = vmatpush3.bf16.msra.mxu1 %v3961_v47 }
0x1a9c   :  { %3553 = vmatprep.subr.bf16.mxu1 %v3962_v27 }
0x1a9d   :  { %2661 = vadd.xlane.f32.xlu0 %v2654_v18 }
0x1a9f   :  { %3554 = vmatpush3.bf16.msra.mxu1 %v3963_v49 }
0x1aa0   :  { %3555 = vmatprep.subr.bf16.mxu1 %v3964_v53 }
0x1aa3   :  { %3556 = vmatpush3.bf16.msra.mxu1 %v3965_v56 }
0x1b22   :  { %v2660_v63 = vpop.xlane.xlu0 %2659 }
0x1b23   :  { %v2663_v0 = vmul.f32 0.0078125, %v2660_v63 }
0x1b25   :  { %v2665_v1 = vsub.f32 %v2653_v57, %v2663_v0  ;;  %v3397_v57 = vld [vmem:[%s4850_s9 + $0x2] sm:$0x3] }
0x1b26   :  { %v2662_v26 = vpop.xlane.xlu0 %2661  ;;  %v2721_v58 = vrot.slane %v3397_v57, %v4369_v2  ;;  %v2725_v60 = vrot.slane %v3397_v57, %v4362_v55 }
0x1b27   :  { %v2664_v3 = vmul.f32 0.0078125, %v2662_v26  ;;  %v2667_v5 = vmul.f32 %v2665_v1, %v2665_v1 }
0x1b29   :  { %v2666_v8 = vsub.f32 %v2654_v18, %v2664_v3  ;;  %2669 = vadd.xlane.f32.xlu0 %v2667_v5 }
0x1b2b   :  { %v2668_v28 = vmul.f32 %v2666_v8, %v2666_v8 }
0x1b2d   :  { %2671 = vadd.xlane.f32.xlu0 %v2668_v28 }
0x1bb2   :  { %v2670_v29 = vpop.xlane.xlu0 %2669 }
0x1bb3   :  { %v2673_v7 = vmul.f32 0.0078125, %v2670_v29 }
0x1bb5   :  { %v2675_v23 = vadd.f32 1e-12, %v2673_v7 }
0x1bb6   :  { %v2672_v30 = vpop.xlane.xlu0 %2671 }
0x1bb7   :  { %4058 = vrsqrt.f32 %v2675_v23  ;;  %v2674_v51 = vmul.f32 0.0078125, %v2672_v30 }
0x1bb9   :  { %v2676_v31 = vadd.f32 1e-12, %v2674_v51 }
0x1bbb   :  { %4060 = vrsqrt.f32 %v2676_v31 }
0x1bc4   :  { %v4059_v32 = vpop.eup %4058 }
0x1bc5   :  { %v2679_v33 = vmul.f32 %v4059_v32, %v2665_v1 }
0x1bc7   :  { %v2687_v37 = vmul.f32 %v3379_v34, %v2679_v33 }
0x1bc8   :  { %v4061_v35 = vpop.eup %4060 }
0x1bc9   :  { %v2680_v36 = vmul.f32 %v4061_v35, %v2666_v8  ;;  %v4804_v50 = vadd.f32 %v3380_v38, %v2687_v37 }
0x1bcb   :  { %v2688_v39 = vmul.f32 %v3379_v34, %v2680_v36 }
0x1bcd   :  { %v4806_v40 = vadd.f32 %v3380_v38, %v2688_v39 }
0x1bcf   :  { %v2714_v41 = vpack.c.bf16 %v4806_v40, %v4804_v50 }
0x1bd1   :  { %2841 = vmatmul.mubr.bf16.vlgmr.msra.gmra.mxu0 %v2714_v41 }
0x1bd2   :  { %3788 = vmatprep.mubr.msk.bf16.mxu0 %vm4194_vm0, %v4192_v4 }
0x1c91   :  { %v2842_v18 = vpop.f32.mrf.mxu0 }
0x1c92   :  { %v2843_v61 = vadd.f32 %v2842_v18, %v2721_v58 }
0x1c93   :  { %v2844_v62 = vpop.f32.mrf.mxu0 }
0x1c94   :  { %v2855_v63 = vmul.f32 0.044715, %v2843_v61  ;;  %v2845_v0 = vadd.f32 %v2844_v62, %v2725_v60  ;;  %v2851_v38 = vmul.f32 0.5, %v2843_v61 }
0x1c95   :  { %v2846_v1 = vpop.f32.mrf.mxu0 }
0x1c96   :  { %v2859_v26 = vmul.f32 %v2855_v63, %v2843_v61  ;;  %v2856_v3 = vmul.f32 0.044715, %v2845_v0  ;;  %v2847_v5 = vadd.f32 %v2846_v1, %v2721_v58  ;;  %v2852_v35 = vmul.f32 0.5, %v2845_v0  ;;  %v3969_v1 = vld [vmem:[#allocation8 + $0x20] sm:$0xff]  }
0x1c97   :  { %v2848_v8 = vpop.f32.mrf.mxu0 }
0x1c98   :  { %v2863_v28 = vmul.f32 %v2859_v26, %v2843_v61  ;;  %v2860_v9 = vmul.f32 %v2856_v3, %v2845_v0  ;;  %v2857_v10 = vmul.f32 0.044715, %v2847_v5  ;;  %v2849_v11 = vadd.f32 %v2848_v8, %v2725_v60  ;;  %v3970_v26 = vld [vmem:[#allocation8 + $0x18] sm:$0xff]   ;;  %v3971_v3 = vld [vmem:[#allocation8 + $0x10] sm:$0xff]   ;;  %v3973_v8 = vld [vmem:[#allocation8] sm:$0xff]  }
0x1c99   :  { %v2853_v33 = vmul.f32 0.5, %v2847_v5 }
0x1c9a   :  { %v2867_v12 = vadd.f32 %v2863_v28, %v2843_v61  ;;  %v2864_v13 = vmul.f32 %v2860_v9, %v2845_v0  ;;  %v2861_v14 = vmul.f32 %v2857_v10, %v2847_v5  ;;  %v2858_v2 = vmul.f32 0.044715, %v2849_v11 }
0x1c9b   :  { %v2854_v36 = vmul.f32 0.5, %v2849_v11 }
0x1c9c   :  { %v2865_v17 = vmul.f32 %v2861_v14, %v2847_v5  ;;  %v2862_v55 = vmul.f32 %v2858_v2, %v2849_v11  ;;  %v2868_v45 = vadd.f32 %v2864_v13, %v2845_v0  ;;  %v2871_v15 = vmul.f32 0.7978846, %v2867_v12  ;;  %v3966_v0 = vld [vmem:[#allocation8 + $0x38] sm:$0xff]   ;;  %v3434_v2 = vld [vmem:[%s4853_s12 + $0x1] ss:$0 sm:$0xff]  ;;  %s4197_s12 = smov [#allocation10]  }
0x1c9d   :  { %3773 = vmatpush3.bf16.msra.mxu0 %v3966_v0  ;;  %s3235_s23 = sshll.u32 %s4197_s12, 4  ;;  %s3236_s23 = int_to_ptr.vmem [resolvable:$true] %s3235_s23 }
0x1c9e   :  { %v2869_v21 = vadd.f32 %v2865_v17, %v2847_v5  ;;  %v2866_v22 = vmul.f32 %v2862_v55, %v2849_v11  ;;  %v2872_v24 = vmul.f32 0.7978846, %v2868_v45  ;;  %3774 = vmatprep.subr.bf16.mxu0 %v4192_v4  ;;  %v3972_v5 = vld [vmem:[#allocation8 + $0x8] sm:$0xff]   ;;  %v3435_v55 = vld [vmem:[%s4854_s13 + $0x1] ss:$0 sm:$0xff]  ;;  %s4156_s13 = scalar_lea.vmem %s3236_s23, 32  ;;  %p4161_p7 = scmp.lt.s32.totalorder %s3236_s23, %s3236_s23 }
0x1c9f   :  { %p4157_p6 = scmp.ne.s32.totalorder %s3236_s23, %s4156_s13  ;;  %p4162_p8 = scmp.lt.s32.totalorder %s4156_s13, %s4156_s13 }
0x1ca0   :  { %v2873_v59 = vmul.f32 0.7978846, %v2869_v21  ;;  %v2870_v25 = vadd.f32 %v2866_v22, %v2849_v11  ;;  %4062 = vtanh.f32 %v2872_v24 }
0x1ca1   :  { %4064 = vtanh.f32 %v2871_v15  ;;  %p4163_p9 = por %p4162_p8, %p4161_p7 }
0x1ca2   :  { %4066 = vtanh.f32 %v2873_v59  ;;  %v2874_v29 = vmul.f32 0.7978846, %v2870_v25 }
0x1ca3   :  { %p4164_p10 = pnand %p4163_p9, %p4157_p6 }
0x1ca4   :  { %4068 = vtanh.f32 %v2874_v29 }
0x1cad   :  { %v4063_v7 = vpop.eup %4062 }
0x1cae   :  { %v4065_v23 = vpop.eup %4064  ;;  %v2880_v51 = vadd.f32 1.0, %v4063_v7  ;;  %v3436_v7 = vld [vmem:[%s4858_s17] ss:$0 sm:$0xff] }
0x1caf   :  { %v4067_v30 = vpop.eup %4066  ;;  %v2879_v34 = vadd.f32 1.0, %v4065_v23 }
0x1cb0   :  { %v2881_v31 = vadd.f32 1.0, %v4067_v30  ;;  %v2884_v41 = vmul.f32 %v2880_v51, %v2852_v35 }
0x1cb1   :  { %v4069_v32 = vpop.eup %4068  ;;  %v2883_v44 = vmul.f32 %v2879_v34, %v2851_v38 }
0x1cb2   :  { %v2882_v37 = vadd.f32 1.0, %v4069_v32  ;;  %v2885_v39 = vmul.f32 %v2881_v31, %v2853_v33 }
0x1cb4   :  { %v2886_v42 = vmul.f32 %v2882_v37, %v2854_v36  ;;  %v2920_v48 = vpack.c.bf16 %v2885_v39, %v2883_v44 }
0x1cb6   :  { %v2921_v16 = vpack.c.bf16 %v2886_v42, %v2884_v41 }
0x1cb8   :  { %3058 = vmatprep.mubr.bf16.mxu1 %v2921_v16 }
0x1cb9   :  { %3059 = vmatmul.mubr.bf16.vlgmr.msra.gmra.mxu1 %v2920_v48 }
0x1d79   :  { %v3557_v52 = vpop.f32.mrf.mxu1 }
0x1d7b   :  { %v3558_v46 = vpop.f32.mrf.mxu1 }
0x1d7c   :  { %v3559_v43 = vadd.f32 %v3558_v46, %v3557_v52 }
0x1d7d   :  { %v3560_v19 = vpop.f32.mrf.mxu1 }
0x1d7e   :  { %v3061_v54 = vadd.f32 %v3559_v43, %v3415_v20 }
0x1d7f   :  { %v3561_v6 = vpop.f32.mrf.mxu1 }
0x1d80   :  { %v3562_v47 = vadd.f32 %v3561_v6, %v3560_v19  ;;  %v3067_v27 = vadd.f32 %v3061_v54, %v4804_v50  ;;  %v3967_v50 = vld [vmem:[#allocation8 + $0x30] sm:$0xff]  }
0x1d81   :  { %3775 = vmatpush3.bf16.msra.mxu0 %v3967_v50 }
0x1d82   :  { %v3064_v49 = vadd.f32 %v3562_v47, %v3415_v20  ;;  %3073 = vadd.xlane.f32.xlu0 %v3067_v27  ;;  %3776 = vmatprep.subr.bf16.mxu0 %v4192_v4 }
0x1d84   :  { %v3068_v53 = vadd.f32 %v3064_v49, %v4806_v40  ;;  %v3968_v40 = vld [vmem:[#allocation8 + $0x28] sm:$0xff]  }
0x1d85   :  { %3777 = vmatpush3.bf16.msra.mxu0 %v3968_v40 }
0x1d86   :  { %3075 = vadd.xlane.f32.xlu1 %v3068_v53  ;;  %3778 = vmatprep.subr.bf16.mxu0 %v4192_v4 }
0x1d89   :  { %3779 = vmatpush3.bf16.msra.mxu0 %v3969_v1 }
0x1d8a   :  { %3780 = vmatprep.subr.bf16.mxu0 %v4192_v4 }
0x1d8d   :  { %3781 = vmatpush3.bf16.msra.mxu0 %v3970_v26 }
0x1d8e   :  { %3782 = vmatprep.subr.bf16.mxu0 %v4192_v4 }
0x1d91   :  { %3783 = vmatpush3.bf16.msra.mxu0 %v3971_v3 }
0x1d92   :  { %3784 = vmatprep.subr.bf16.mxu0 %v4192_v4 }
0x1d95   :  { %3785 = vmatpush3.bf16.msra.mxu0 %v3972_v5 }
0x1d96   :  { %3786 = vmatprep.subr.bf16.mxu0 %v4192_v4 }
0x1d99   :  { %3787 = vmatpush3.bf16.msra.mxu0 %v3973_v8 }
0x1e0b   :  { %v3074_v56 = vpop.xlane.xlu0 %3073 }
0x1e0c   :  { %v3077_v58 = vmul.f32 0.0078125, %v3074_v56 }
0x1e0e   :  { %v3079_v61 = vsub.f32 %v3067_v27, %v3077_v58 }
0x1e0f   :  { %v3076_v57 = vpop.xlane.xlu1 %3075 }
0x1e10   :  { %v3078_v60 = vmul.f32 0.0078125, %v3076_v57  ;;  %v3081_v63 = vmul.f32 %v3079_v61, %v3079_v61 }
0x1e12   :  { %v3080_v18 = vsub.f32 %v3068_v53, %v3078_v60 }
0x1e14   :  { %v3082_v62 = vmul.f32 %v3080_v18, %v3080_v18 }
0x1e16   :  { %3085 = vadd.xlane.f32.xlu0 %v3082_v62 }
0x1e1a   :  { %3083 = vadd.xlane.f32.xlu0 %v3081_v63 }
0x1e9f   :  { %v3086_v28 = vpop.xlane.xlu0 %3085 }
0x1ea0   :  { %v3088_v9 = vmul.f32 0.0078125, %v3086_v28 }
0x1ea2   :  { %v3090_v10 = vadd.f32 1e-12, %v3088_v9 }
0x1ea3   :  { %v3084_v11 = vpop.xlane.xlu0 %3083 }
0x1ea4   :  { %4070 = vrsqrt.f32 %v3090_v10  ;;  %v3087_v12 = vmul.f32 0.0078125, %v3084_v11 }
0x1ea6   :  { %v3089_v13 = vadd.f32 1e-12, %v3087_v12 }
0x1ea8   :  { %4072 = vrsqrt.f32 %v3089_v13 }
0x1eb1   :  { %v4071_v14 = vpop.eup %4070 }
0x1eb2   :  { %v3094_v17 = vmul.f32 %v4071_v14, %v3080_v18 }
0x1eb4   :  { %v3102_v4 = vmul.f32 %v3434_v2, %v3094_v17 }
0x1eb5   :  { %v4073_v45 = vpop.eup %4072 }
0x1eb6   :  { %v3093_v15 = vmul.f32 %v4073_v45, %v3079_v61  ;;  %v3110_v21 = vadd.f32 %v3435_v55, %v3102_v4 }
0x1eb8   :  { %v3101_v22 = vmul.f32 %v3434_v2, %v3093_v15  ;;  %v3112_v59 = vrot.slane %v3110_v21, 7 }
0x1eba   :  { %v3109_v24 = vadd.f32 %v3435_v55, %v3101_v22 }
0x1ebc   :  { %v3115_v25 = vsel %vm3114_vm3, %v3109_v24, %v3112_v59 }
0x1ebd   :  { %v3132_v29 = vpack.c.bf16 %v3115_v25, %v3115_v25 }
0x1ebf   :  { %3789 = vmatmul.mubr.bf16.vlgmr.msra.gmra.mxu0 %v3132_v29 }
0x1f7f   :  { %v3222_v23 = vpop.f32.mrf.mxu0 }
0x1f80   :  { %v3223_v30 = vadd.f32 %v3436_v7, %v3222_v23 }
0x1f81   :  { %v3790_v51 = vpop.f32.mrf.mxu0 }
0x1f82   :  { %3228 = vst [vmem:[#allocation10] sm:$0x3] %v3223_v30 }
0x1f83   :  { %v3225_v31 = vpop.f32.mrf.mxu0 }
0x1f84   :  { %4167 = shalt.err (!%p4164_p10)
}
0x1f85   :  { %3238 = dma.vmem_to_hbm [thread:$0]  %s3236_s23, 32, %s4859_s18, [#allocation4]   ;;  %v3791_v32 = vpop.f32.mrf.mxu0 }
0x1f86   :  { %4182 = dma.done.wait [#allocation4], 32  }
0x1f87   :  { %4183 = vsyncadd [#allocation4], 4294967264 }
0x1f88   :  { %3242 = vsyncpa [#allocation3], 1 }
0x1f89   :  { %3243 = vsyncpa [#allocation6], 1 }
0x1f8a   :  { %3244 = vsyncpa [#allocation9], 1 }
0x1f8b   :  { %3245 = vsyncpa [#allocation4], 1 }

</bundles_post_ra>
